<compile_context>
chip_gen: v5e
topology: v5e:2x2
jax: 0.10.0
libtpu: 0.0.40
codegen_flags: <defaults>
</compile_context>

<pallas_src>
import functools

import jax
import jax.numpy as jnp
from jax.experimental import pallas as pl
from jax.experimental.pallas import tpu as pltpu

IN_DIM = 784
H1, H2, H3, OUT_DIM = 356, 124, 64, 10
# Lane-padded feature dims.
H1P, H2P, H3P, OUTP = 384, 128, 128, 128
BN_EPS = 1e-5
NEG_BIG = -1e30  # bias for padded logit lanes; exp() underflows to 0.


def _mlp_kernel(x_ref,
                w1_ref, t1_ref,
                w2_ref, t2_ref,
                w3_ref, t3_ref,
                w4_ref, b4_ref,
                out_ref):
    """Fused MLP forward for one batch tile:
       (matmul -> shift -> relu) x3 -> matmul + bias -> log_softmax."""
    x = x_ref[...].astype(jnp.bfloat16)

    # Layer 1 (fc1 + folded BN1 + relu). Dropout is identity in eval mode.
    h = jnp.dot(x, w1_ref[...], preferred_element_type=jnp.float32)
    h = jnp.maximum(h + t1_ref[...], 0.0)

    # Layer 2 (fc2 + folded BN2 + relu).
    h = jnp.dot(h.astype(jnp.bfloat16), w2_ref[...], preferred_element_type=jnp.float32)
    h = jnp.maximum(h + t2_ref[...], 0.0)

    # Layer 3 (fc3 + folded BN3 + relu).
    h = jnp.dot(h.astype(jnp.bfloat16), w3_ref[...], preferred_element_type=jnp.float32)
    h = jnp.maximum(h + t3_ref[...], 0.0)

    # Layer 4 (fc4) + log_softmax over classes. Padded lanes carry -1e30 bias.
    logits = jnp.dot(h.astype(jnp.bfloat16), w4_ref[...],
                     preferred_element_type=jnp.float32) + b4_ref[...]
    m = jnp.max(logits, axis=-1, keepdims=True)
    z = logits - m
    lse = jnp.log(jnp.sum(jnp.exp(z), axis=-1, keepdims=True))
    out_ref[...] = z - lse


def _round_up(n, m):
    return (n + m - 1) // m * m


def _fold_bn_into_weight(w, b, gamma, beta, mean, var, eps=BN_EPS):
    """bn(xW + b) = (xW)*s + t with s folded into W's columns.
       s = gamma / sqrt(var+eps),  t = (b - mean)*s + beta."""
    s = gamma * jax.lax.rsqrt(var + eps)
    return w * s[None, :], (b - mean) * s + beta


def _pad2(a, rows, cols):
    return jnp.pad(a, ((0, rows - a.shape[0]), (0, cols - a.shape[1])))


def _pad_row(v, cols, fill=0.0):
    v = v.reshape(1, -1)
    return jnp.pad(v, ((0, 0), (0, cols - v.shape[1])), constant_values=fill)


@jax.jit
def network_forward(x, params):
    """x: (B, 1, 28, 28) float32 (NCHW) or anything reshapeable to (B, 784)."""
    xb = x.reshape(-1, IN_DIM).astype(jnp.float32)
    B = xb.shape[0]

    # ---- Parameter prep (tiny one-time JAX ops): fold BN, pad, cast to bf16.
    w1, t1 = _fold_bn_into_weight(params["w1"], params["b1"], params["g1"],
                                  params["be1"], params["rm1"], params["rv1"])
    w2, t2 = _fold_bn_into_weight(params["w2"], params["b2"], params["g2"],
                                  params["be2"], params["rm2"], params["rv2"])
    w3, t3 = _fold_bn_into_weight(params["w3"], params["b3"], params["g3"],
                                  params["be3"], params["rm3"], params["rv3"])

    w1p = _pad2(w1, IN_DIM, H1P).astype(jnp.bfloat16)
    w2p = _pad2(w2, H1P, H2P).astype(jnp.bfloat16)
    w3p = _pad2(w3, H2P, H3P).astype(jnp.bfloat16)
    w4p = _pad2(params["w4"], H3P, OUTP).astype(jnp.bfloat16)
    t1p = _pad_row(t1, H1P)
    t2p = _pad_row(t2, H2P)
    t3p = _pad_row(t3, H3P)
    b4p = _pad_row(params["b4"], OUTP, fill=NEG_BIG)

    # ---- Batch tiling: TB up to 512 rows (multiple of 256 for the v6e MXU),
    #      pad B up to a whole number of tiles.
    TB = 512 if B >= 512 else _round_up(B, 8)
    Bp = _round_up(B, TB)
    if Bp != B:
        xb = jnp.pad(xb, ((0, Bp - B), (0, 0)))
    grid = (Bp // TB,)

    tile_map = lambda i: (i, 0)    # x / out: tiled over batch grid
    fixed_map = lambda i: (0, 0)   # weights / shifts: resident in VMEM

    in_specs = [
        pl.BlockSpec((TB, IN_DIM), tile_map),
        pl.BlockSpec((IN_DIM, H1P), fixed_map), pl.BlockSpec((1, H1P), fixed_map),
        pl.BlockSpec((H1P, H2P), fixed_map),    pl.BlockSpec((1, H2P), fixed_map),
        pl.BlockSpec((H2P, H3P), fixed_map),    pl.BlockSpec((1, H3P), fixed_map),
        pl.BlockSpec((H3P, OUTP), fixed_map),   pl.BlockSpec((1, OUTP), fixed_map),
    ]
    out_spec = pl.BlockSpec((TB, OUTP), tile_map)

    weight_elems = IN_DIM * H1P + H1P * H2P + H2P * H3P + H3P * OUTP
    cost = pl.CostEstimate(
        flops=2 * Bp * weight_elems,
        transcendentals=Bp * (OUTP + 1),
        bytes_accessed=(Bp * IN_DIM * 4 + Bp * OUTP * 4
                        + 2 * weight_elems
                        + 4 * (H1P + H2P + H3P + OUTP)),
    )

    out = pl.pallas_call(
        _mlp_kernel,
        out_shape=jax.ShapeDtypeStruct((Bp, OUTP), jnp.float32),
        grid_spec=pltpu.PrefetchScalarGridSpec(
            num_scalar_prefetch=0,
            grid=grid,
            in_specs=in_specs,
            out_specs=out_spec,
        ),
        compiler_params=pltpu.CompilerParams(
            dimension_semantics=("parallel",),
        ),
        cost_estimate=cost,
    )(xb, w1p, t1p, w2p, t2p, w3p, t3p, w4p, b4p)

    return out[:B, :OUT_DIM]


def _reference_forward(x, params):
    """Pure-JAX f32 reference (eval-mode semantics) for validation."""
    xb = x.reshape(-1, IN_DIM).astype(jnp.float32)

    def layer(h, w, b, g, be, rm, rv):
        y = h @ w + b
        y = (y - rm) / jnp.sqrt(rv + BN_EPS) * g + be
        return jnp.maximum(y, 0.0)

    h = layer(xb, params["w1"], params["b1"], params["g1"], params["be1"],
              params["rm1"], params["rv1"])
    h = layer(h, params["w2"], params["b2"], params["g2"], params["be2"],
              params["rm2"], params["rv2"])
    h = layer(h, params["w3"], params["b3"], params["g3"], params["be3"],
              params["rm3"], params["rv3"])
    logits = h @ params["w4"] + params["b4"]
    return jax.nn.log_softmax(logits, axis=-1)


def init_params(key):
    """Deterministic init mirroring torch.nn defaults (Linear: U(-1/sqrt(fan_in), +),
    BatchNorm1d: gamma=1, beta=0, running_mean=0, running_var=1).
    Weights stored as (in_features, out_features) = transpose of PyTorch storage."""
    dims = [(IN_DIM, H1), (H1, H2), (H2, H3), (H3, OUT_DIM)]
    params = {}
    keys = jax.random.split(key, 2 * len(dims))
    for i, (fin, fout) in enumerate(dims, start=1):
        bound = 1.0 / (fin ** 0.5)
        params[f"w{i}"] = jax.random.uniform(
            keys[2 * (i - 1)], (fin, fout), jnp.float32, -bound, bound)
        params[f"b{i}"] = jax.random.uniform(
            keys[2 * (i - 1) + 1], (fout,), jnp.float32, -bound, bound)
    for i, f in zip((1, 2, 3), (H1, H2, H3)):
        params[f"g{i}"] = jnp.ones((f,), jnp.float32)    # BN gamma
        params[f"be{i}"] = jnp.zeros((f,), jnp.float32)  # BN beta
        params[f"rm{i}"] = jnp.zeros((f,), jnp.float32)  # running mean
        params[f"rv{i}"] = jnp.ones((f,), jnp.float32)   # running var
    return params
    # TODO(synk): training-mode dropout / batch-statistics BN not implemented
    # (forward here matches the module in eval() mode).


if __name__ == "__main__":
    key = jax.random.PRNGKey(0)
    pkey, xkey = jax.random.split(key)
    params = init_params(pkey)

    # Small Fashion-MNIST-like batch: (B, 1, 28, 28) NCHW.
    x = jax.random.normal(xkey, (8, 1, 28, 28), jnp.float32)

    out = jax.block_until_ready(network_forward(x, params))
    assert out.shape == (8, 10)

    # log_softmax rows should exp-sum to ~1.
    row_sums = jnp.exp(out).sum(axis=1)
    assert bool(jnp.all(jnp.abs(row_sums - 1.0) < 1e-4))

    # Compare against a pure-JAX f32 reference (bf16 matmuls => loose tol).
    ref = _reference_forward(x, params)
    assert bool(jnp.max(jnp.abs(out - ref)) < 0.15)

    # Exercise the multi-tile grid path (B > TB, ragged last tile is padded).
    x_big = jax.random.normal(jax.random.PRNGKey(1), (1040, 1, 28, 28), jnp.float32)
    out_big = jax.block_until_ready(network_forward(x_big, params))
    assert out_big.shape == (1040, 10)
    assert bool(jnp.all(jnp.abs(jnp.exp(out_big).sum(axis=1) - 1.0) < 1e-4))

    print("KERNEL_OK")
</pallas_src>

<mosaic_0001>
module attributes {stable_mosaic.version = 11 : i64} {
  func.func @_mlp_kernel(%arg0: i32, %arg1: memref<8x784xf32, #tpu.memory_space<vmem>>, %arg2: memref<784x384xbf16, #tpu.memory_space<vmem>>, %arg3: memref<1x384xf32, #tpu.memory_space<vmem>>, %arg4: memref<384x128xbf16, #tpu.memory_space<vmem>>, %arg5: memref<1x128xf32, #tpu.memory_space<vmem>>, %arg6: memref<128x128xbf16, #tpu.memory_space<vmem>>, %arg7: memref<1x128xf32, #tpu.memory_space<vmem>>, %arg8: memref<128x128xbf16, #tpu.memory_space<vmem>>, %arg9: memref<1x128xf32, #tpu.memory_space<vmem>>, %arg10: memref<8x128xf32, #tpu.memory_space<vmem>>) attributes {dimension_semantics = [#tpu.dimension_semantics<parallel>], iteration_bounds = array<i64: 1>, scalar_prefetch = 0 : i64, scratch_operands = 0 : i64, tpu.core_type = #tpu.core_type<tc>, window_params = [{transform_indices = @transform_0, window_bounds = array<i64: 8, 784>}, {pipeline_mode = #tpu.pipeline_mode<synchronous>, transform_indices = @transform_1, window_bounds = array<i64: 784, 384>}, {pipeline_mode = #tpu.pipeline_mode<synchronous>, transform_indices = @transform_2, window_bounds = array<i64: 1, 384>}, {pipeline_mode = #tpu.pipeline_mode<synchronous>, transform_indices = @transform_3, window_bounds = array<i64: 384, 128>}, {pipeline_mode = #tpu.pipeline_mode<synchronous>, transform_indices = @transform_4, window_bounds = array<i64: 1, 128>}, {pipeline_mode = #tpu.pipeline_mode<synchronous>, transform_indices = @transform_5, window_bounds = array<i64: 128, 128>}, {pipeline_mode = #tpu.pipeline_mode<synchronous>, transform_indices = @transform_6, window_bounds = array<i64: 1, 128>}, {pipeline_mode = #tpu.pipeline_mode<synchronous>, transform_indices = @transform_7, window_bounds = array<i64: 128, 128>}, {pipeline_mode = #tpu.pipeline_mode<synchronous>, transform_indices = @transform_8, window_bounds = array<i64: 1, 128>}, {transform_indices = @transform_9, window_bounds = array<i64: 8, 128>}]} {
    %c0 = arith.constant 0 : index
    %c0_0 = arith.constant 0 : index
    %0 = vector.load %arg1[%c0, %c0_0] : memref<8x784xf32, #tpu.memory_space<vmem>>, vector<8x784xf32>
    %1 = arith.truncf %0 : vector<8x784xf32> to vector<8x784xbf16>
    %c0_1 = arith.constant 0 : index
    %c0_2 = arith.constant 0 : index
    %2 = vector.load %arg2[%c0_1, %c0_2] : memref<784x384xbf16, #tpu.memory_space<vmem>>, vector<784x384xbf16>
    %cst = arith.constant dense<0.000000e+00> : vector<8x384xf32>
    %3 = tpu.matmul %1, %2, %cst {dimension_numbers = #tpu.dot_dimension_numbers<[1], [0], [0], [1], [0, 0, 1, 1], [], []>} : vector<8x784xbf16>, vector<784x384xbf16>, vector<8x384xf32> -> vector<8x384xf32>
    %c0_3 = arith.constant 0 : index
    %c0_4 = arith.constant 0 : index
    %4 = vector.load %arg3[%c0_3, %c0_4] : memref<1x384xf32, #tpu.memory_space<vmem>>, vector<1x384xf32>
    %5 = vector.broadcast %4 : vector<1x384xf32> to vector<8x384xf32>
    %6 = arith.addf %3, %5 : vector<8x384xf32>
    %cst_5 = arith.constant 0.000000e+00 : f32
    %7 = vector.broadcast %cst_5 : f32 to vector<8x384xf32>
    %8 = arith.maximumf %6, %7 : vector<8x384xf32>
    %9 = arith.truncf %8 : vector<8x384xf32> to vector<8x384xbf16>
    %c0_6 = arith.constant 0 : index
    %c0_7 = arith.constant 0 : index
    %10 = vector.load %arg4[%c0_6, %c0_7] : memref<384x128xbf16, #tpu.memory_space<vmem>>, vector<384x128xbf16>
    %cst_8 = arith.constant dense<0.000000e+00> : vector<8x128xf32>
    %11 = tpu.matmul %9, %10, %cst_8 {dimension_numbers = #tpu.dot_dimension_numbers<[1], [0], [0], [1], [0, 0, 1, 1], [], []>} : vector<8x384xbf16>, vector<384x128xbf16>, vector<8x128xf32> -> vector<8x128xf32>
    %c0_9 = arith.constant 0 : index
    %c0_10 = arith.constant 0 : index
    %12 = vector.load %arg5[%c0_9, %c0_10] : memref<1x128xf32, #tpu.memory_space<vmem>>, vector<1x128xf32>
    %13 = vector.broadcast %12 : vector<1x128xf32> to vector<8x128xf32>
    %14 = arith.addf %11, %13 : vector<8x128xf32>
    %cst_11 = arith.constant 0.000000e+00 : f32
    %15 = vector.broadcast %cst_11 : f32 to vector<8x128xf32>
    %16 = arith.maximumf %14, %15 : vector<8x128xf32>
    %17 = arith.truncf %16 : vector<8x128xf32> to vector<8x128xbf16>
    %c0_12 = arith.constant 0 : index
    %c0_13 = arith.constant 0 : index
    %18 = vector.load %arg6[%c0_12, %c0_13] : memref<128x128xbf16, #tpu.memory_space<vmem>>, vector<128x128xbf16>
    %cst_14 = arith.constant dense<0.000000e+00> : vector<8x128xf32>
    %19 = tpu.matmul %17, %18, %cst_14 {dimension_numbers = #tpu.dot_dimension_numbers<[1], [0], [0], [1], [0, 0, 1, 1], [], []>} : vector<8x128xbf16>, vector<128x128xbf16>, vector<8x128xf32> -> vector<8x128xf32>
    %c0_15 = arith.constant 0 : index
    %c0_16 = arith.constant 0 : index
    %20 = vector.load %arg7[%c0_15, %c0_16] : memref<1x128xf32, #tpu.memory_space<vmem>>, vector<1x128xf32>
    %21 = vector.broadcast %20 : vector<1x128xf32> to vector<8x128xf32>
    %22 = arith.addf %19, %21 : vector<8x128xf32>
    %cst_17 = arith.constant 0.000000e+00 : f32
    %23 = vector.broadcast %cst_17 : f32 to vector<8x128xf32>
    %24 = arith.maximumf %22, %23 : vector<8x128xf32>
    %25 = arith.truncf %24 : vector<8x128xf32> to vector<8x128xbf16>
    %c0_18 = arith.constant 0 : index
    %c0_19 = arith.constant 0 : index
    %26 = vector.load %arg8[%c0_18, %c0_19] : memref<128x128xbf16, #tpu.memory_space<vmem>>, vector<128x128xbf16>
    %cst_20 = arith.constant dense<0.000000e+00> : vector<8x128xf32>
    %27 = tpu.matmul %25, %26, %cst_20 {dimension_numbers = #tpu.dot_dimension_numbers<[1], [0], [0], [1], [0, 0, 1, 1], [], []>} : vector<8x128xbf16>, vector<128x128xbf16>, vector<8x128xf32> -> vector<8x128xf32>
    %c0_21 = arith.constant 0 : index
    %c0_22 = arith.constant 0 : index
    %28 = vector.load %arg9[%c0_21, %c0_22] : memref<1x128xf32, #tpu.memory_space<vmem>>, vector<1x128xf32>
    %29 = vector.broadcast %28 : vector<1x128xf32> to vector<8x128xf32>
    %30 = arith.addf %27, %29 : vector<8x128xf32>
    %cst_23 = arith.constant dense<0xFF800000> : vector<8xf32>
    %31 = vector.multi_reduction <maximumf>, %30, %cst_23 [1] : vector<8x128xf32> to vector<8xf32>
    %32 = vector.shape_cast %31 : vector<8xf32> to vector<8x1xf32>
    %33 = vector.broadcast %32 : vector<8x1xf32> to vector<8x128xf32>
    %34 = arith.subf %30, %33 : vector<8x128xf32>
    %35 = math.exp %34 : vector<8x128xf32>
    %cst_24 = arith.constant dense<0.000000e+00> : vector<8xf32>
    %36 = vector.multi_reduction <add>, %35, %cst_24 [1] : vector<8x128xf32> to vector<8xf32>
    %37 = vector.shape_cast %36 : vector<8xf32> to vector<8x1xf32>
    %38 = math.log %37 : vector<8x1xf32>
    %39 = vector.broadcast %38 : vector<8x1xf32> to vector<8x128xf32>
    %40 = arith.subf %34, %39 : vector<8x128xf32>
    %c0_25 = arith.constant 0 : index
    %c0_26 = arith.constant 0 : index
    %41 = vector.load %arg10[%c0_25, %c0_26] : memref<8x128xf32, #tpu.memory_space<vmem>>, vector<8x128xf32>
    tpu.vector_store %arg10[%c0_25, %c0_26], %40 {strides = array<i32>} : memref<8x128xf32, #tpu.memory_space<vmem>>, vector<8x128xf32>,
    return
  }
  func.func @transform_0(%arg0: i32) -> (i32, i32) {
    %c0_i32 = arith.constant 0 : i32
    %c0_i32_0 = arith.constant 0 : i32
    return %arg0, %c0_i32 : i32, i32
  }
  func.func @transform_1(%arg0: i32) -> (i32, i32) {
    %c0_i32 = arith.constant 0 : i32
    %c0_i32_0 = arith.constant 0 : i32
    %c0_i32_1 = arith.constant 0 : i32
    return %c0_i32, %c0_i32_0 : i32, i32
  }
  func.func @transform_2(%arg0: i32) -> (i32, i32) {
    %c0_i32 = arith.constant 0 : i32
    %c0_i32_0 = arith.constant 0 : i32
    %c0_i32_1 = arith.constant 0 : i32
    return %c0_i32, %c0_i32_0 : i32, i32
  }
  func.func @transform_3(%arg0: i32) -> (i32, i32) {
    %c0_i32 = arith.constant 0 : i32
    %c0_i32_0 = arith.constant 0 : i32
    %c0_i32_1 = arith.constant 0 : i32
    return %c0_i32, %c0_i32_0 : i32, i32
  }
  func.func @transform_4(%arg0: i32) -> (i32, i32) {
    %c0_i32 = arith.constant 0 : i32
    %c0_i32_0 = arith.constant 0 : i32
    %c0_i32_1 = arith.constant 0 : i32
    return %c0_i32, %c0_i32_0 : i32, i32
  }
  func.func @transform_5(%arg0: i32) -> (i32, i32) {
    %c0_i32 = arith.constant 0 : i32
    %c0_i32_0 = arith.constant 0 : i32
    %c0_i32_1 = arith.constant 0 : i32
    return %c0_i32, %c0_i32_0 : i32, i32
  }
  func.func @transform_6(%arg0: i32) -> (i32, i32) {
    %c0_i32 = arith.constant 0 : i32
    %c0_i32_0 = arith.constant 0 : i32
    %c0_i32_1 = arith.constant 0 : i32
    return %c0_i32, %c0_i32_0 : i32, i32
  }
  func.func @transform_7(%arg0: i32) -> (i32, i32) {
    %c0_i32 = arith.constant 0 : i32
    %c0_i32_0 = arith.constant 0 : i32
    %c0_i32_1 = arith.constant 0 : i32
    return %c0_i32, %c0_i32_0 : i32, i32
  }
  func.func @transform_8(%arg0: i32) -> (i32, i32) {
    %c0_i32 = arith.constant 0 : i32
    %c0_i32_0 = arith.constant 0 : i32
    %c0_i32_1 = arith.constant 0 : i32
    return %c0_i32, %c0_i32_0 : i32, i32
  }
  func.func @transform_9(%arg0: i32) -> (i32, i32) {
    %c0_i32 = arith.constant 0 : i32
    %c0_i32_0 = arith.constant 0 : i32
    return %arg0, %c0_i32 : i32, i32
  }
}

</mosaic_0001>

<bundles_post_ra>
// kernel: network_forward.1
= control target key start
LH: loop header
LB: loop body
LE: loop exit
PB: predicated region body
PF: predicated region fallthrough
CT: control target
= control target key end

     0   :  { %vm1036_vm0 = vcmask 130048   ;;  %s3851_s0 = inlined_call_operand.vmem [shape: f32[8,784], index: 0, kind: input, shape index: {}]   ;;  %s3852_s1 = inlined_call_operand.vmem [shape: bf16[784,384], index: 1, kind: input, shape index: {}]   ;;  %s3853_s2 = inlined_call_operand.vmem [shape: f32[1,384], index: 2, kind: input, shape index: {}]   ;;  %s3854_s3 = inlined_call_operand.vmem [shape: bf16[384,128], index: 3, kind: input, shape index: {}]   ;;  %s3855_s4 = inlined_call_operand.vmem [shape: f32[1,128], index: 4, kind: input, shape index: {}]   ;;  %s3856_s5 = inlined_call_operand.vmem [shape: bf16[128,128], index: 5, kind: input, shape index: {}]   ;;  %s3857_s6 = inlined_call_operand.vmem [shape: f32[1,128], index: 6, kind: input, shape index: {}]   ;;  %s3858_s7 = inlined_call_operand.vmem [shape: bf16[128,128], index: 7, kind: input, shape index: {}]   ;;  %s3859_s8 = inlined_call_operand.vmem [shape: f32[1,128], index: 8, kind: input, shape index: {}]   ;;  %s3860_s9 = inlined_call_operand.hbm [shape: f32[8,128], index: 9, kind: output, shape index: {}]  }
   0x1   :  { %v1833_v0 = vld [vmem:[%s3852_s1 + $0xa8] sm:$0xf]  ;;  %v2520_v1 = vld [vmem:[%s3852_s1 + $0xb0] sm:$0xf0]  ;;  %v1821_v9 = vld [vmem:[%s3852_s1 + $0x90] sm:$0xf] }
   0x2   :  { %v1929_v2 = vld [vmem:[%s3852_s1 + $0x168] sm:$0xf]  ;;  %v1834_v3 = vor.u32 %v2520_v1, %v1833_v0  ;;  %v2544_v4 = vld [vmem:[%s3852_s1 + $0x170] sm:$0xf0]  ;;  %v2517_v10 = vld [vmem:[%s3852_s1 + $0x98] sm:$0xf0] }
   0x3   :  { %v2121_v5 = vld [vmem:[%s3852_s1 + $0x2e8] sm:$0xf]  ;;  %v2592_v6 = vld [vmem:[%s3852_s1 + $0x2f0] sm:$0xf0]  ;;  %v1930_v7 = vor.u32 %v2544_v4, %v1929_v2  ;;  %v1917_v11 = vld [vmem:[%s3852_s1 + $0x150] sm:$0xf]  ;;  %v1822_v12 = vor.u32 %v2517_v10, %v1821_v9 }
   0x4   :  { %v2122_v8 = vor.u32 %v2592_v6, %v2121_v5  ;;  %1040 = vmatpush.bf16.msra.mxu0 %v1834_v3  ;;  %v2541_v13 = vld [vmem:[%s3852_s1 + $0x158] sm:$0xf0]  ;;  %v2109_v14 = vld [vmem:[%s3852_s1 + $0x2d0] sm:$0xf]  ;;  %v2025_v18 = vld [vmem:[%s3852_s1 + $0x228] sm:$0xf] }
   0x5   :  { %v2589_v15 = vld [vmem:[%s3852_s1 + $0x2d8] sm:$0xf0]  ;;  %1053 = vmatpush.bf16.msra.mxu1 %v1930_v7  ;;  %v1918_v16 = vor.u32 %v2541_v13, %v1917_v11  ;;  %v2568_v19 = vld [vmem:[%s3852_s1 + $0x230] sm:$0xf0]  ;;  %v1809_v20 = vld [vmem:[%s3852_s1 + $0x78] sm:$0xf] }
   0x6   :  { %1079 = vmatpush.bf16.msra.mxu3 %v2122_v8  ;;  %v2110_v17 = vor.u32 %v2589_v15, %v2109_v14  ;;  %v2026_v21 = vor.u32 %v2568_v19, %v2025_v18  ;;  %v2514_v22 = vld [vmem:[%s3852_s1 + $0x80] sm:$0xf0]  ;;  %v1905_v23 = vld [vmem:[%s3852_s1 + $0x138] sm:$0xf]  ;;  %v2013_v27 = vld [vmem:[%s3852_s1 + $0x210] sm:$0xf] }
   0x7   :  { %v2538_v24 = vld [vmem:[%s3852_s1 + $0x140] sm:$0xf0]  ;;  %v2097_v25 = vld [vmem:[%s3852_s1 + $0x2b8] sm:$0xf]  ;;  %v1810_v28 = vor.u32 %v2514_v22, %v1809_v20  ;;  %v2565_v29 = vld [vmem:[%s3852_s1 + $0x218] sm:$0xf0] }
   0x8   :  { %v2586_v26 = vld [vmem:[%s3852_s1 + $0x2c0] sm:$0xf0]  ;;  %1041 = vmatpush.bf16.msra.mxu0 %v1822_v12  ;;  %1066 = vmatpush.bf16.msra.mxu2 %v2026_v21  ;;  %v1797_v30 = vld [vmem:[%s3852_s1 + $0x60] sm:$0xf]  ;;  %v2511_v31 = vld [vmem:[%s3852_s1 + $0x68] sm:$0xf0]  ;;  %v1906_v32 = vor.u32 %v2538_v24, %v1905_v23  ;;  %v2014_v34 = vor.u32 %v2565_v29, %v2013_v27 }
   0x9   :  { %1054 = vmatpush.bf16.msra.mxu1 %v1918_v16  ;;  %v2098_v33 = vor.u32 %v2586_v26, %v2097_v25  ;;  %v1893_v35 = vld [vmem:[%s3852_s1 + $0x120] sm:$0xf]  ;;  %v2535_v36 = vld [vmem:[%s3852_s1 + $0x128] sm:$0xf0]  ;;  %v2001_v39 = vld [vmem:[%s3852_s1 + $0x1f8] sm:$0xf]  ;;  %v1798_v41 = vor.u32 %v2511_v31, %v1797_v30 }
   0xa   :  { %1080 = vmatpush.bf16.msra.mxu3 %v2110_v17  ;;  %v2085_v37 = vld [vmem:[%s3852_s1 + $0x2a0] sm:$0xf]  ;;  %v2583_v38 = vld [vmem:[%s3852_s1 + $0x2a8] sm:$0xf0]  ;;  %v2562_v40 = vld [vmem:[%s3852_s1 + $0x200] sm:$0xf0]  ;;  %v1894_v45 = vor.u32 %v2535_v36, %v1893_v35 }
   0xb   :  { %v2002_v42 = vor.u32 %v2562_v40, %v2001_v39  ;;  %v1785_v43 = vld [vmem:[%s3852_s1 + $0x48] sm:$0xf]  ;;  %v2508_v44 = vld [vmem:[%s3852_s1 + $0x50] sm:$0xf0]  ;;  %v2086_v46 = vor.u32 %v2583_v38, %v2085_v37  ;;  %v1989_v48 = vld [vmem:[%s3852_s1 + $0x1e0] sm:$0xf] }
   0xc   :  { %1042 = vmatpush.bf16.msra.mxu0 %v1810_v28  ;;  %1067 = vmatpush.bf16.msra.mxu2 %v2014_v34  ;;  %v1881_v47 = vld [vmem:[%s3852_s1 + $0x108] sm:$0xf]  ;;  %v2559_v49 = vld [vmem:[%s3852_s1 + $0x1e8] sm:$0xf0]  ;;  %v2532_v50 = vld [vmem:[%s3852_s1 + $0x110] sm:$0xf0]  ;;  %v1786_v53 = vor.u32 %v2508_v44, %v1785_v43 }
   0xd   :  { %1055 = vmatpush.bf16.msra.mxu1 %v1906_v32  ;;  %v2073_v51 = vld [vmem:[%s3852_s1 + $0x288] sm:$0xf]  ;;  %v2580_v52 = vld [vmem:[%s3852_s1 + $0x290] sm:$0xf0]  ;;  %v1990_v54 = vor.u32 %v2559_v49, %v1989_v48  ;;  %v1773_v55 = vld [vmem:[%s3852_s1 + $0x30] sm:$0xf]  ;;  %v1882_v57 = vor.u32 %v2532_v50, %v1881_v47 }
   0xe   :  { %1081 = vmatpush.bf16.msra.mxu3 %v2098_v33  ;;  %v2505_v56 = vld [vmem:[%s3852_s1 + $0x38] sm:$0xf0]  ;;  %v2074_v58 = vor.u32 %v2580_v52, %v2073_v51  ;;  %v1869_v59 = vld [vmem:[%s3852_s1 + $0xf0] sm:$0xf]  ;;  %v1977_v60 = vld [vmem:[%s3852_s1 + $0x1c8] sm:$0xf] }
   0xf   :  { %v2556_v61 = vld [vmem:[%s3852_s1 + $0x1d0] sm:$0xf0]  ;;  %v2529_v62 = vld [vmem:[%s3852_s1 + $0xf8] sm:$0xf0]  ;;  %v2061_v63 = vld [vmem:[%s3852_s1 + $0x270] sm:$0xf]  ;;  %v1774_v1 = vor.u32 %v2505_v56, %v1773_v55 }
  0x10   :  { %1043 = vmatpush.bf16.msra.mxu0 %v1798_v41  ;;  %1068 = vmatpush.bf16.msra.mxu2 %v2002_v42  ;;  %v2577_v0 = vld [vmem:[%s3852_s1 + $0x278] sm:$0xf0]  ;;  %v1978_v2 = vor.u32 %v2556_v61, %v1977_v60  ;;  %v1761_v3 = vld [vmem:[%s3852_s1 + $0x18] sm:$0xf]  ;;  %v2502_v4 = vld [vmem:[%s3852_s1 + $0x20] sm:$0xf0]  ;;  %v1870_v5 = vor.u32 %v2529_v62, %v1869_v59 }
  0x11   :  { %1056 = vmatpush.bf16.msra.mxu1 %v1894_v45  ;;  %v2062_v6 = vor.u32 %v2577_v0, %v2061_v63  ;;  %v1857_v7 = vld [vmem:[%s3852_s1 + $0xd8] sm:$0xf]  ;;  %v1965_v8 = vld [vmem:[%s3852_s1 + $0x1b0] sm:$0xf]  ;;  %v2553_v9 = vld [vmem:[%s3852_s1 + $0x1b8] sm:$0xf0]  ;;  %v1762_v13 = vor.u32 %v2502_v4, %v1761_v3 }
  0x12   :  { %1082 = vmatpush.bf16.msra.mxu3 %v2086_v46  ;;  %v2526_v10 = vld [vmem:[%s3852_s1 + $0xe0] sm:$0xf0]  ;;  %v2049_v11 = vld [vmem:[%s3852_s1 + $0x258] sm:$0xf]  ;;  %v1966_v14 = vor.u32 %v2553_v9, %v1965_v8  ;;  %v1749_v15 = vld [vmem:[%s3852_s1] sm:$0xf] }
  0x13   :  { %v2574_v12 = vld [vmem:[%s3852_s1 + $0x260] sm:$0xf0]  ;;  %v2499_v16 = vld [vmem:[%s3852_s1 + $0x8] sm:$0xf0]  ;;  %v1845_v17 = vld [vmem:[%s3852_s1 + $0xc0] sm:$0xf]  ;;  %v1858_v18 = vor.u32 %v2526_v10, %v1857_v7 }
  0x14   :  { %1044 = vmatpush.bf16.msra.mxu0 %v1786_v53  ;;  %1069 = vmatpush.bf16.msra.mxu2 %v1990_v54  ;;  %v2050_v19 = vor.u32 %v2574_v12, %v2049_v11  ;;  %v2523_v20 = vld [vmem:[%s3852_s1 + $0xc8] sm:$0xf0]  ;;  %v1953_v21 = vld [vmem:[%s3852_s1 + $0x198] sm:$0xf]  ;;  %v2550_v22 = vld [vmem:[%s3852_s1 + $0x1a0] sm:$0xf0]  ;;  %v1750_v29 = vor.u32 %v2499_v16, %v1749_v15 }
  0x15   :  { %1057 = vmatpush.bf16.msra.mxu1 %v1882_v57  ;;  %v2037_v23 = vld [vmem:[%s3852_s1 + $0x240] sm:$0xf]  ;;  %v2571_v24 = vld [vmem:[%s3852_s1 + $0x248] sm:$0xf0]  ;;  %v2217_v25 = vld [vmem:[%s3852_s1 + $0x3a8] sm:$0xf]  ;;  %v1954_v30 = vor.u32 %v2550_v22, %v1953_v21  ;;  %v1846_v33 = vor.u32 %v2523_v20, %v1845_v17 }
  0x16   :  { %1083 = vmatpush.bf16.msra.mxu3 %v2074_v58  ;;  %v2616_v26 = vld [vmem:[%s3852_s1 + $0x3b0] sm:$0xf0]  ;;  %v2313_v27 = vld [vmem:[%s3852_s1 + $0x468] sm:$0xf]  ;;  %v2519_v31 = vld [vmem:[%s3852_s1 + $0xac] sm:$0xf]  ;;  %v2038_v34 = vor.u32 %v2571_v24, %v2037_v23 }
  0x17   :  { %v2640_v28 = vld [vmem:[%s3852_s1 + $0x470] sm:$0xf0]  ;;  %v1835_v32 = vld [vmem:[%s3852_s1 + $0xb4] sm:$0xf0]  ;;  %v1941_v35 = vld [vmem:[%s3852_s1 + $0x180] sm:$0xf]  ;;  %v2218_v38 = vor.u32 %v2616_v26, %v2217_v25 }
  0x18   :  { %1045 = vmatpush.bf16.msra.mxu0 %v1774_v1  ;;  %1070 = vmatpush.bf16.msra.mxu2 %v1978_v2  ;;  %v2547_v36 = vld [vmem:[%s3852_s1 + $0x188] sm:$0xf0]  ;;  %v2205_v37 = vld [vmem:[%s3852_s1 + $0x390] sm:$0xf]  ;;  %v2314_v39 = vor.u32 %v2640_v28, %v2313_v27  ;;  %v2613_v40 = vld [vmem:[%s3852_s1 + $0x398] sm:$0xf0]  ;;  %v1838_v43 = vor.u32 %v2519_v31, %v1835_v32 }
  0x19   :  { %1058 = vmatpush.bf16.msra.mxu1 %v1870_v5  ;;  %v2325_v41 = vld [vmem:[%s3852_s1 + $0x480] sm:$0xf]  ;;  %v2643_v42 = vld [vmem:[%s3852_s1 + $0x488] sm:$0xf0]  ;;  %v2301_v44 = vld [vmem:[%s3852_s1 + $0x450] sm:$0xf]  ;;  %v1942_v47 = vor.u32 %v2547_v36, %v1941_v35  ;;  %v2206_v55 = vor.u32 %v2613_v40, %v2205_v37 }
  0x1a   :  { %1084 = vmatpush.bf16.msra.mxu3 %v2062_v6  ;;  %v2637_v45 = vld [vmem:[%s3852_s1 + $0x458] sm:$0xf0]  ;;  %v2516_v46 = vld [vmem:[%s3852_s1 + $0x94] sm:$0xf]  ;;  %v1823_v48 = vld [vmem:[%s3852_s1 + $0x9c] sm:$0xf0]  ;;  %v2326_v51 = vor.u32 %v2643_v42, %v2325_v41 }
  0x1b   :  { %v36_v49 = vld [vmem:[%s3851_s0 + $0x10] sm:$0xff]  ;;  %v34_v50 = vld [vmem:[%s3851_s0] sm:$0xff]  ;;  %v2543_v52 = vld [vmem:[%s3852_s1 + $0x16c] sm:$0xf]  ;;  %v2302_v56 = vor.u32 %v2637_v45, %v2301_v44  ;;  %v1826_v59 = vor.u32 %v2516_v46, %v1823_v48 }
  0x1c   :  { %1046 = vmatpush.bf16.msra.mxu0 %v1762_v13  ;;  %1071 = vmatpush.bf16.msra.mxu2 %v1966_v14  ;;  %v1931_v53 = vld [vmem:[%s3852_s1 + $0x174] sm:$0xf0]  ;;  %v3016_v54 = vpack.c.bf16 %v34_v50, %v34_v50  ;;  %v2610_v58 = vld [vmem:[%s3852_s1 + $0x380] sm:$0xf0]  ;;  %v3024_v60 = vpack.c.bf16 %v36_v49, %v36_v49  ;;  %v35_v63 = vld [vmem:[%s3851_s0 + $0x8] sm:$0xff] }
  0x1d   :  { %1059 = vmatpush.bf16.msra.mxu1 %v1858_v18  ;;  %v2193_v57 = vld [vmem:[%s3852_s1 + $0x378] sm:$0xf]  ;;  %v2634_v62 = vld [vmem:[%s3852_s1 + $0x440] sm:$0xf0]  ;;  %v2513_v0 = vld [vmem:[%s3852_s1 + $0x7c] sm:$0xf]  ;;  %v1934_v2 = vor.u32 %v2543_v52, %v1931_v53  ;;  %v3042_v3 = vpack.c.bf16 %v35_v63, %v35_v63 }
  0x1e   :  { %1085 = vmatpush.bf16.msra.mxu3 %v2050_v19  ;;  %v2289_v61 = vld [vmem:[%s3852_s1 + $0x438] sm:$0xf]  ;;  %v1811_v1 = vld [vmem:[%s3852_s1 + $0x84] sm:$0xf0]  ;;  %v2540_v4 = vld [vmem:[%s3852_s1 + $0x154] sm:$0xf]  ;;  %v2194_v6 = vor.u32 %v2610_v58, %v2193_v57 }
  0x1f   :  { %v1919_v5 = vld [vmem:[%s3852_s1 + $0x15c] sm:$0xf0]  ;;  %v2290_v7 = vor.u32 %v2634_v62, %v2289_v61  ;;  %v37_v9 = vld [vmem:[%s3851_s0 + $0x18] sm:$0xff]  ;;  %v1814_v10 = vor.u32 %v2513_v0, %v1811_v1  ;;  %v2607_v11 = vld [vmem:[%s3852_s1 + $0x368] sm:$0xf0] }
  0x20   :  { %1047 = vmatpush.bf16.msra.mxu0 %v1750_v29  ;;  %1072 = vmatpush.bf16.msra.mxu2 %v1954_v30  ;;  %v2181_v8 = vld [vmem:[%s3852_s1 + $0x360] sm:$0xf]  ;;  %v2631_v13 = vld [vmem:[%s3852_s1 + $0x428] sm:$0xf0]  ;;  %v3066_v14 = vpack.c.bf16 %v37_v9, %v37_v9  ;;  %v2510_v15 = vld [vmem:[%s3852_s1 + $0x64] sm:$0xf]  ;;  %v1922_v17 = vor.u32 %v2540_v4, %v1919_v5 }
  0x21   :  { %1060 = vmatpush.bf16.msra.mxu1 %v1846_v33  ;;  %v2277_v12 = vld [vmem:[%s3852_s1 + $0x420] sm:$0xf]  ;;  %v1799_v16 = vld [vmem:[%s3852_s1 + $0x6c] sm:$0xf0]  ;;  %v2537_v18 = vld [vmem:[%s3852_s1 + $0x13c] sm:$0xf]  ;;  %v2182_v20 = vor.u32 %v2607_v11, %v2181_v8 }
  0x22   :  { %1086 = vmatpush.bf16.msra.mxu3 %v2038_v34  ;;  %v1907_v19 = vld [vmem:[%s3852_s1 + $0x144] sm:$0xf0]  ;;  %v2278_v21 = vor.u32 %v2631_v13, %v2277_v12  ;;  %v1802_v23 = vor.u32 %v2510_v15, %v1799_v16  ;;  %v2604_v24 = vld [vmem:[%s3852_s1 + $0x350] sm:$0xf0]  ;;  %v2507_v27 = vld [vmem:[%s3852_s1 + $0x4c] sm:$0xf] }
  0x23   :  { %1048 = vmatmul.bf16.vlgmr.msra.gmra.mxu0 %v3016_v54  ;;  %v2169_v22 = vld [vmem:[%s3852_s1 + $0x348] sm:$0xf]  ;;  %v2628_v26 = vld [vmem:[%s3852_s1 + $0x410] sm:$0xf0]  ;;  %v1787_v28 = vld [vmem:[%s3852_s1 + $0x54] sm:$0xf0]  ;;  %v1910_v29 = vor.u32 %v2537_v18, %v1907_v19 }
  0x24   :  { %1092 = vmatpush.bf16.msrb.mxu0 %v2218_v38  ;;  %1073 = vmatpush.bf16.msra.mxu2 %v1942_v47  ;;  %v2265_v25 = vld [vmem:[%s3852_s1 + $0x408] sm:$0xf]  ;;  %v2534_v30 = vld [vmem:[%s3852_s1 + $0x124] sm:$0xf]  ;;  %v1895_v31 = vld [vmem:[%s3852_s1 + $0x12c] sm:$0xf0]  ;;  %v2170_v32 = vor.u32 %v2604_v24, %v2169_v22  ;;  %v1790_v35 = vor.u32 %v2507_v27, %v1787_v28 }
  0x25   :  { %1105 = vmatpush.bf16.msrb.mxu1 %v2314_v39  ;;  %1087 = vmatmul.bf16.vlgmr.msra.gmra.mxu3 %v3066_v14  ;;  %v2266_v33 = vor.u32 %v2628_v26, %v2265_v25  ;;  %v2157_v34 = vld [vmem:[%s3852_s1 + $0x330] sm:$0xf]  ;;  %v2601_v36 = vld [vmem:[%s3852_s1 + $0x338] sm:$0xf0]  ;;  %v2504_v39 = vld [vmem:[%s3852_s1 + $0x34] sm:$0xf]  ;;  %v1898_v41 = vor.u32 %v2534_v30, %v1895_v31 }
  0x26   :  { %1131 = vmatpush.bf16.msrb.mxu3 %v1838_v43  ;;  %1061 = vmatmul.bf16.vlgmr.msra.gmra.mxu1 %v3042_v3  ;;  %v2253_v37 = vld [vmem:[%s3852_s1 + $0x3f0] sm:$0xf]  ;;  %v2625_v38 = vld [vmem:[%s3852_s1 + $0x3f8] sm:$0xf0]  ;;  %v1775_v40 = vld [vmem:[%s3852_s1 + $0x3c] sm:$0xf0]  ;;  %v2158_v45 = vor.u32 %v2601_v36, %v2157_v34 }
  0x27   :  { %1074 = vmatmul.bf16.vlgmr.msra.gmra.mxu2 %v3024_v60  ;;  %v40_v42 = vld [vmem:[%s3851_s0 + $0x30] sm:$0xff]  ;;  %v2531_v43 = vld [vmem:[%s3852_s1 + $0x10c] sm:$0xf]  ;;  %v1883_v44 = vld [vmem:[%s3852_s1 + $0x114] sm:$0xf0]  ;;  %v2254_v46 = vor.u32 %v2625_v38, %v2253_v37  ;;  %v1778_v48 = vor.u32 %v2504_v39, %v1775_v40 }
  0x28   :  { %1125 = vmatpush.bf16.msrb.mxu2 %v2326_v51  ;;  %1093 = vmatpush.bf16.msrb.mxu0 %v2206_v55  ;;  %v2145_v47 = vld [vmem:[%s3852_s1 + $0x318] sm:$0xf]  ;;  %v2598_v49 = vld [vmem:[%s3852_s1 + $0x320] sm:$0xf0]  ;;  %v3145_v52 = vpack.c.bf16 %v40_v42, %v40_v42  ;;  %v2501_v53 = vld [vmem:[%s3852_s1 + $0x1c] sm:$0xf] }
  0x29   :  { %1106 = vmatpush.bf16.msrb.mxu1 %v2302_v56  ;;  %v2241_v50 = vld [vmem:[%s3852_s1 + $0x3d8] sm:$0xf]  ;;  %v2622_v51 = vld [vmem:[%s3852_s1 + $0x3e0] sm:$0xf0]  ;;  %v1763_v55 = vld [vmem:[%s3852_s1 + $0x24] sm:$0xf0]  ;;  %v1886_v56 = vor.u32 %v2531_v43, %v1883_v44 }
  0x2a   :  { %1132 = vmatpush.bf16.msrb.mxu3 %v1826_v59  ;;  %v2528_v57 = vld [vmem:[%s3852_s1 + $0xf4] sm:$0xf]  ;;  %v1871_v58 = vld [vmem:[%s3852_s1 + $0xfc] sm:$0xf0]  ;;  %v2146_v59 = vor.u32 %v2598_v49, %v2145_v47  ;;  %v2242_v61 = vor.u32 %v2622_v51, %v2241_v50  ;;  %v2595_v63 = vld [vmem:[%s3852_s1 + $0x308] sm:$0xf0]  ;;  %v1766_v1 = vor.u32 %v2501_v53, %v1763_v55 }
  0x2b   :  { %v2133_v62 = vld [vmem:[%s3852_s1 + $0x300] sm:$0xf]  ;;  %v2498_v4 = vld [vmem:[%s3852_s1 + $0x4] sm:$0xf]  ;;  %v1751_v5 = vld [vmem:[%s3852_s1 + $0xc] sm:$0xf0] }
  0x2c   :  { %1144 = vmatpush.bf16.msra.mxu2 %v1934_v2  ;;  %1094 = vmatpush.bf16.msrb.mxu0 %v2194_v6  ;;  %v2229_v0 = vld [vmem:[%s3852_s1 + $0x3c0] sm:$0xf]  ;;  %v2619_v2 = vld [vmem:[%s3852_s1 + $0x3c8] sm:$0xf0]  ;;  %v1874_v6 = vor.u32 %v2528_v57, %v1871_v58  ;;  %v2027_v8 = vld [vmem:[%s3852_s1 + $0x234] sm:$0xf0]  ;;  %v2134_v13 = vor.u32 %v2595_v63, %v2133_v62  ;;  %v1754_v19 = vor.u32 %v2498_v4, %v1751_v5 }
  0x2d   :  { %1107 = vmatpush.bf16.msrb.mxu1 %v2290_v7  ;;  %v2567_v7 = vld [vmem:[%s3852_s1 + $0x22c] sm:$0xf]  ;;  %v2219_v12 = vld [vmem:[%s3852_s1 + $0x3b4] sm:$0xf0]  ;;  %v2230_v15 = vor.u32 %v2619_v2, %v2229_v0  ;;  %v38_v16 = vld [vmem:[%s3851_s0 + $0x20] sm:$0xff] }
  0x2e   :  { %1133 = vmatpush.bf16.msrb.mxu3 %v1814_v10  ;;  %v2591_v9 = vld [vmem:[%s3852_s1 + $0x2ec] sm:$0xf]  ;;  %v2123_v10 = vld [vmem:[%s3852_s1 + $0x2f4] sm:$0xf0]  ;;  %v1859_v18 = vld [vmem:[%s3852_s1 + $0xe4] sm:$0xf0]  ;;  %v3218_v27 = vpack.c.bf16 %v38_v16, %v38_v16 }
  0x2f   :  { %v2615_v11 = vld [vmem:[%s3852_s1 + $0x3ac] sm:$0xf]  ;;  %v2126_v22 = vor.u32 %v2591_v9, %v2123_v10  ;;  %v2564_v24 = vld [vmem:[%s3852_s1 + $0x214] sm:$0xf]  ;;  %v2015_v25 = vld [vmem:[%s3852_s1 + $0x21c] sm:$0xf0] }
  0x30   :  { %1145 = vmatpush.bf16.msra.mxu2 %v1922_v17  ;;  %1095 = vmatpush.bf16.msrb.mxu0 %v2182_v20  ;;  %v2525_v17 = vld [vmem:[%s3852_s1 + $0xdc] sm:$0xf]  ;;  %v2030_v20 = vor.u32 %v2567_v7, %v2027_v8  ;;  %v2588_v26 = vld [vmem:[%s3852_s1 + $0x2d4] sm:$0xf]  ;;  %v2207_v31 = vld [vmem:[%s3852_s1 + $0x39c] sm:$0xf0] }
  0x31   :  { %1108 = vmatpush.bf16.msrb.mxu1 %v2278_v21  ;;  %v39_v21 = vld [vmem:[%s3851_s0 + $0x28] sm:$0xff]  ;;  %v1862_v28 = vor.u32 %v2525_v17, %v1859_v18  ;;  %v2612_v30 = vld [vmem:[%s3852_s1 + $0x394] sm:$0xf]  ;;  %v1847_v34 = vld [vmem:[%s3852_s1 + $0xcc] sm:$0xf0] }
  0x32   :  { %1134 = vmatpush.bf16.msrb.mxu3 %v1802_v23  ;;  %v2222_v23 = vor.u32 %v2615_v11, %v2219_v12  ;;  %v2639_v36 = vld [vmem:[%s3852_s1 + $0x46c] sm:$0xf]  ;;  %v2315_v37 = vld [vmem:[%s3852_s1 + $0x474] sm:$0xf0]  ;;  %v2210_v39 = vor.u32 %v2612_v30, %v2207_v31  ;;  %v2561_v40 = vld [vmem:[%s3852_s1 + $0x1fc] sm:$0xf] }
  0x33   :  { %v2585_v42 = vld [vmem:[%s3852_s1 + $0x2bc] sm:$0xf]  ;;  %v2099_v44 = vld [vmem:[%s3852_s1 + $0x2c4] sm:$0xf0]  ;;  %v2318_v47 = vor.u32 %v2639_v36, %v2315_v37  ;;  %v2636_v49 = vld [vmem:[%s3852_s1 + $0x454] sm:$0xf] }
  0x34   :  { %1146 = vmatpush.bf16.msra.mxu2 %v1910_v29  ;;  %1096 = vmatpush.bf16.msrb.mxu0 %v2170_v32  ;;  %v2111_v29 = vld [vmem:[%s3852_s1 + $0x2dc] sm:$0xf0]  ;;  %v3229_v32 = vpack.c.bf16 %v39_v21, %v39_v21  ;;  %v2102_v51 = vor.u32 %v2585_v42, %v2099_v44  ;;  %v2558_v55 = vld [vmem:[%s3852_s1 + $0x1e4] sm:$0xf]  ;;  %v2087_v58 = vld [vmem:[%s3852_s1 + $0x2ac] sm:$0xf0] }
  0x35   :  { %1109 = vmatpush.bf16.msrb.mxu1 %v2266_v33  ;;  %v2522_v33 = vld [vmem:[%s3852_s1 + $0xc4] sm:$0xf]  ;;  %v2114_v38 = vor.u32 %v2588_v26, %v2111_v29  ;;  %v2303_v50 = vld [vmem:[%s3852_s1 + $0x45c] sm:$0xf0]  ;;  %v2633_v0 = vld [vmem:[%s3852_s1 + $0x43c] sm:$0xf] }
  0x36   :  { %1135 = vmatpush.bf16.msrb.mxu3 %v1790_v35  ;;  %v2018_v35 = vor.u32 %v2564_v24, %v2015_v25  ;;  %v1850_v43 = vor.u32 %v2522_v33, %v1847_v34  ;;  %v2582_v57 = vld [vmem:[%s3852_s1 + $0x2a4] sm:$0xf]  ;;  %v2306_v62 = vor.u32 %v2636_v49, %v2303_v50  ;;  %v2555_v5 = vld [vmem:[%s3852_s1 + $0x1cc] sm:$0xf]  ;;  %v2075_v8 = vld [vmem:[%s3852_s1 + $0x294] sm:$0xf0] }
  0x37   :  { %2335 = vmatmul.msk.bf16.vlgmr.msrb.gmra.mxu2 %vm1036_vm0, %v3145_v52  ;;  %v2090_v2 = vor.u32 %v2582_v57, %v2087_v58  ;;  %v2579_v7 = vld [vmem:[%s3852_s1 + $0x28c] sm:$0xf]  ;;  %v2171_v10 = vld [vmem:[%s3852_s1 + $0x354] sm:$0xf0]  ;;  %v2552_v12 = vld [vmem:[%s3852_s1 + $0x1b4] sm:$0xf] }
  0x38   :  { %1147 = vmatpush.bf16.msra.mxu2 %v1898_v41  ;;  %1097 = vmatpush.bf16.msrb.mxu0 %v2158_v45  ;;  %v2003_v41 = vld [vmem:[%s3852_s1 + $0x204] sm:$0xf0]  ;;  %v2609_v45 = vld [vmem:[%s3852_s1 + $0x37c] sm:$0xf]  ;;  %v2603_v9 = vld [vmem:[%s3852_s1 + $0x34c] sm:$0xf]  ;;  %v2078_v18 = vor.u32 %v2579_v7, %v2075_v8 }
  0x39   :  { %1110 = vmatpush.bf16.msrb.mxu1 %v2254_v46  ;;  %v2195_v46 = vld [vmem:[%s3852_s1 + $0x384] sm:$0xf0]  ;;  %v2630_v16 = vld [vmem:[%s3852_s1 + $0x424] sm:$0xf]  ;;  %v2279_v17 = vld [vmem:[%s3852_s1 + $0x42c] sm:$0xf0] }
  0x3a   :  { %1136 = vmatpush.bf16.msrb.mxu3 %v1778_v48  ;;  %v2006_v48 = vor.u32 %v2561_v40, %v2003_v41  ;;  %v2198_v53 = vor.u32 %v2609_v45, %v2195_v46  ;;  %v2063_v21 = vld [vmem:[%s3852_s1 + $0x27c] sm:$0xf0]  ;;  %v2282_v24 = vor.u32 %v2630_v16, %v2279_v17  ;;  %v2549_v25 = vld [vmem:[%s3852_s1 + $0x19c] sm:$0xf]  ;;  %v2627_v29 = vld [vmem:[%s3852_s1 + $0x40c] sm:$0xf] }
  0x3b   :  { %v2267_v30 = vld [vmem:[%s3852_s1 + $0x414] sm:$0xf0]  ;;  %v2573_v34 = vld [vmem:[%s3852_s1 + $0x25c] sm:$0xf]  ;;  %v2147_v37 = vld [vmem:[%s3852_s1 + $0x324] sm:$0xf0] }
  0x3c   :  { %1148 = vmatpush.bf16.msra.mxu2 %v1886_v56  ;;  %1098 = vmatpush.bf16.msrb.mxu0 %v2146_v59  ;;  %v1991_v56 = vld [vmem:[%s3852_s1 + $0x1ec] sm:$0xf0]  ;;  %v2606_v59 = vld [vmem:[%s3852_s1 + $0x364] sm:$0xf]  ;;  %v2597_v36 = vld [vmem:[%s3852_s1 + $0x31c] sm:$0xf] }
  0x3d   :  { %1111 = vmatpush.bf16.msrb.mxu1 %v2242_v61  ;;  %v2183_v61 = vld [vmem:[%s3852_s1 + $0x36c] sm:$0xf0]  ;;  %v1994_v63 = vor.u32 %v2558_v55, %v1991_v56 }
  0x3e   :  { %1137 = vmatpush.bf16.msrb.mxu3 %v1766_v1  ;;  %v2291_v1 = vld [vmem:[%s3852_s1 + $0x444] sm:$0xf0]  ;;  %v2186_v4 = vor.u32 %v2606_v59, %v2183_v61 }
  0x3f   :  { %v2294_v11 = vor.u32 %v2633_v0, %v2291_v1 }
  0x40   :  { %1149 = vmatpush.bf16.msra.mxu2 %v1874_v6  ;;  %1099 = vmatpush.bf16.msrb.mxu0 %v2134_v13  ;;  %v1979_v6 = vld [vmem:[%s3852_s1 + $0x1d4] sm:$0xf0] }
  0x41   :  { %1112 = vmatpush.bf16.msrb.mxu1 %v2230_v15  ;;  %v1982_v13 = vor.u32 %v2555_v5, %v1979_v6  ;;  %v1967_v15 = vld [vmem:[%s3852_s1 + $0x1bc] sm:$0xf0] }
  0x42   :  { %1138 = vmatpush.bf16.msrb.mxu3 %v1754_v19  ;;  %v2174_v19 = vor.u32 %v2603_v9, %v2171_v10  ;;  %v1970_v26 = vor.u32 %v2552_v12, %v1967_v15 }
  0x43   :  { %1100 = vmatmul.bf16.vlgmr.msrb.gmra.mxu0 %v3218_v27 }
  0x44   :  { %1157 = vmatpush.bf16.msra.mxu0 %v2030_v20  ;;  %1150 = vmatpush.bf16.msra.mxu2 %v1862_v28  ;;  %v2576_v20 = vld [vmem:[%s3852_s1 + $0x274] sm:$0xf]  ;;  %v1955_v28 = vld [vmem:[%s3852_s1 + $0x1a4] sm:$0xf0] }
  0x45   :  { %1170 = vmatpush.bf16.msra.mxu1 %v2126_v22  ;;  %1139 = vmatmul.bf16.vlgmr.msrb.gmra.mxu3 %v3016_v54  ;;  %v2600_v22 = vld [vmem:[%s3852_s1 + $0x334] sm:$0xf]  ;;  %v2066_v31 = vor.u32 %v2576_v20, %v2063_v21 }
  0x46   :  { %1183 = vmatpush.bf16.msra.mxu3 %v2222_v23  ;;  %1113 = vmatmul.bf16.vlgmr.msrb.gmra.mxu1 %v3229_v32  ;;  %v2159_v23 = vld [vmem:[%s3852_s1 + $0x33c] sm:$0xf0] }
  0x47   :  { %v2162_v33 = vor.u32 %v2600_v22, %v2159_v23 }
  0x48   :  { %1158 = vmatpush.bf16.msra.mxu0 %v2018_v35  ;;  %1151 = vmatpush.bf16.msra.mxu2 %v1850_v43  ;;  %v2051_v35 = vld [vmem:[%s3852_s1 + $0x264] sm:$0xf0] }
  0x49   :  { %1171 = vmatpush.bf16.msra.mxu1 %v2114_v38 }
  0x4a   :  { %1184 = vmatpush.bf16.msra.mxu3 %v2210_v39 }
  0x4b   :  { %1152 = vmatmul.bf16.vlgmr.msra.gmra.mxu2 %v3042_v3 }
  0x4c   :  { %1196 = vmatpush.bf16.msrb.mxu2 %v2318_v47  ;;  %1159 = vmatpush.bf16.msra.mxu0 %v2006_v48 }
  0x4d   :  { %1172 = vmatpush.bf16.msra.mxu1 %v2102_v51 }
  0x4e   :  { %1185 = vmatpush.bf16.msra.mxu3 %v2198_v53 }
  0x50   :  { %1197 = vmatpush.bf16.msrb.mxu2 %v2306_v62  ;;  %1160 = vmatpush.bf16.msra.mxu0 %v1994_v63 }
  0x51   :  { %1173 = vmatpush.bf16.msra.mxu1 %v2090_v2 }
  0x52   :  { %1186 = vmatpush.bf16.msra.mxu3 %v2186_v4 }
  0x54   :  { %1198 = vmatpush.bf16.msrb.mxu2 %v2294_v11  ;;  %1161 = vmatpush.bf16.msra.mxu0 %v1982_v13 }
  0x55   :  { %1174 = vmatpush.bf16.msra.mxu1 %v2078_v18 }
  0x56   :  { %1187 = vmatpush.bf16.msra.mxu3 %v2174_v19 }
  0x57   :  { %14 = vsyncpa [#allocation3], 0  ;;  %v2270_v38 = vor.u32 %v2627_v29, %v2267_v30  ;;  %v1958_v39 = vor.u32 %v2549_v25, %v1955_v28  ;;  %v2546_v40 = vld [vmem:[%s3852_s1 + $0x184] sm:$0xf]  ;;  %v2624_v41 = vld [vmem:[%s3852_s1 + $0x3f4] sm:$0xf]  ;;  %v2054_v43 = vor.u32 %v2573_v34, %v2051_v35  ;;  %v2150_v44 = vor.u32 %v2597_v36, %v2147_v37 }
  0x58   :  { %1199 = vmatpush.bf16.msrb.mxu2 %v2282_v24  ;;  %1162 = vmatpush.bf16.msra.mxu0 %v1970_v26  ;;  %v2255_v42 = vld [vmem:[%s3852_s1 + $0x3fc] sm:$0xf0]  ;;  %v1943_v45 = vld [vmem:[%s3852_s1 + $0x18c] sm:$0xf0]  ;;  %v2570_v46 = vld [vmem:[%s3852_s1 + $0x244] sm:$0xf] }
  0x59   :  { %1175 = vmatpush.bf16.msra.mxu1 %v2066_v31  ;;  %v2039_v47 = vld [vmem:[%s3852_s1 + $0x24c] sm:$0xf0]  ;;  %v2594_v48 = vld [vmem:[%s3852_s1 + $0x304] sm:$0xf]  ;;  %v2258_v51 = vor.u32 %v2624_v41, %v2255_v42  ;;  %v2521_v53 = vld [vmem:[%s3852_s1 + $0xb8] sm:$0xf0]  ;;  %v1946_v57 = vor.u32 %v2546_v40, %v1943_v45 }
  0x5a   :  { %1188 = vmatpush.bf16.msra.mxu3 %v2162_v33  ;;  %v2135_v49 = vld [vmem:[%s3852_s1 + $0x30c] sm:$0xf0]  ;;  %v2545_v56 = vld [vmem:[%s3852_s1 + $0x178] sm:$0xf0]  ;;  %v2243_v59 = vld [vmem:[%s3852_s1 + $0x3e4] sm:$0xf0]  ;;  %v2042_v61 = vor.u32 %v2570_v46, %v2039_v47 }
  0x5b   :  { %v1841_v50 = vld [vmem:[%s3852_s1 + $0xb0] sm:$0xf]  ;;  %v2621_v58 = vld [vmem:[%s3852_s1 + $0x3dc] sm:$0xf]  ;;  %v2138_v62 = vor.u32 %v2594_v48, %v2135_v49  ;;  %v1829_v63 = vld [vmem:[%s3852_s1 + $0x98] sm:$0xf] }
  0x5c   :  { %1200 = vmatpush.bf16.msrb.mxu2 %v2270_v38  ;;  %v1937_v55 = vld [vmem:[%s3852_s1 + $0x170] sm:$0xf]  ;;  %1163 = vmatpush.bf16.msra.mxu0 %v1958_v39  ;;  %v1842_v0 = vor.u32 %v2521_v53, %v1841_v50  ;;  %v2518_v2 = vld [vmem:[%s3852_s1 + $0xa0] sm:$0xf0]  ;;  %v2246_v6 = vor.u32 %v2621_v58, %v2243_v59  ;;  %v1925_v7 = vld [vmem:[%s3852_s1 + $0x158] sm:$0xf] }
  0x5d   :  { %1176 = vmatpush.bf16.msra.mxu1 %v2054_v43  ;;  %v1938_v1 = vor.u32 %v2545_v56, %v1937_v55  ;;  %v2642_v4 = vld [vmem:[%s3852_s1 + $0x484] sm:$0xf]  ;;  %v2327_v5 = vld [vmem:[%s3852_s1 + $0x48c] sm:$0xf0]  ;;  %v2569_v12 = vld [vmem:[%s3852_s1 + $0x238] sm:$0xf0]  ;;  %v1830_v17 = vor.u32 %v2518_v2, %v1829_v63 }
  0x5e   :  { %1189 = vmatpush.bf16.msra.mxu3 %v2150_v44  ;;  %v2542_v8 = vld [vmem:[%s3852_s1 + $0x160] sm:$0xf0]  ;;  %v2231_v10 = vld [vmem:[%s3852_s1 + $0x3cc] sm:$0xf0]  ;;  %v2330_v13 = vor.u32 %v2642_v4, %v2327_v5  ;;  %v2593_v16 = vld [vmem:[%s3852_s1 + $0x2f8] sm:$0xf0] }
  0x5f   :  { %v2618_v9 = vld [vmem:[%s3852_s1 + $0x3c4] sm:$0xf]  ;;  %v2033_v11 = vld [vmem:[%s3852_s1 + $0x230] sm:$0xf]  ;;  %v1926_v18 = vor.u32 %v2542_v8, %v1925_v7  ;;  %v1817_v19 = vld [vmem:[%s3852_s1 + $0x80] sm:$0xf] }
  0x60   :  { %1201 = vmatpush.bf16.msrb.mxu2 %v2258_v51  ;;  %1164 = vmatpush.bf16.msra.mxu0 %v1946_v57  ;;  %v2129_v15 = vld [vmem:[%s3852_s1 + $0x2f0] sm:$0xf]  ;;  %v2234_v20 = vor.u32 %v2618_v9, %v2231_v10  ;;  %v2515_v21 = vld [vmem:[%s3852_s1 + $0x88] sm:$0xf0]  ;;  %v1913_v22 = vld [vmem:[%s3852_s1 + $0x140] sm:$0xf]  ;;  %v2034_v24 = vor.u32 %v2569_v12, %v2033_v11 }
  0x61   :  { %1177 = vmatpush.bf16.msra.mxu1 %v2042_v61  ;;  %v2539_v23 = vld [vmem:[%s3852_s1 + $0x148] sm:$0xf0]  ;;  %v2021_v25 = vld [vmem:[%s3852_s1 + $0x218] sm:$0xf]  ;;  %v2566_v26 = vld [vmem:[%s3852_s1 + $0x220] sm:$0xf0]  ;;  %v2130_v28 = vor.u32 %v2593_v16, %v2129_v15  ;;  %v1818_v31 = vor.u32 %v2515_v21, %v1817_v19 }
  0x62   :  { %1190 = vmatpush.bf16.msra.mxu3 %v2138_v62  ;;  %v2117_v29 = vld [vmem:[%s3852_s1 + $0x2d8] sm:$0xf]  ;;  %v2590_v30 = vld [vmem:[%s3852_s1 + $0x2e0] sm:$0xf0]  ;;  %v1914_v33 = vor.u32 %v2539_v23, %v1913_v22  ;;  %v1805_v34 = vld [vmem:[%s3852_s1 + $0x68] sm:$0xf]  ;;  %v2022_v38 = vor.u32 %v2566_v26, %v2021_v25 }
  0x63   :  { %1165 = vmatmul.bf16.vlgmr.msra.gmra.mxu0 %v3024_v60  ;;  %v2512_v35 = vld [vmem:[%s3852_s1 + $0x70] sm:$0xf0]  ;;  %v1901_v36 = vld [vmem:[%s3852_s1 + $0x128] sm:$0xf]  ;;  %v2009_v39 = vld [vmem:[%s3852_s1 + $0x200] sm:$0xf]  ;;  %v2118_v41 = vor.u32 %v2590_v30, %v2117_v29 }
  0x64   :  { %1202 = vmatpush.bf16.msrb.mxu2 %v2246_v6  ;;  %1178 = vmatmul.bf16.vlgmr.msra.gmra.mxu1 %v3066_v14  ;;  %v2536_v37 = vld [vmem:[%s3852_s1 + $0x130] sm:$0xf0]  ;;  %v2563_v40 = vld [vmem:[%s3852_s1 + $0x208] sm:$0xf0]  ;;  %v2105_v42 = vld [vmem:[%s3852_s1 + $0x2c0] sm:$0xf]  ;;  %v1806_v44 = vor.u32 %v2512_v35, %v1805_v34 }
  0x65   :  { %1222 = vmatpush.bf16.msrb.mxu1 %v1842_v0  ;;  %1191 = vmatmul.bf16.vlgmr.msra.gmra.mxu3 %v3218_v27  ;;  %v2587_v43 = vld [vmem:[%s3852_s1 + $0x2c8] sm:$0xf0]  ;;  %v1902_v45 = vor.u32 %v2536_v37, %v1901_v36  ;;  %v1793_v46 = vld [vmem:[%s3852_s1 + $0x50] sm:$0xf]  ;;  %v2509_v47 = vld [vmem:[%s3852_s1 + $0x58] sm:$0xf0]  ;;  %v2010_v50 = vor.u32 %v2563_v40, %v2009_v39 }
  0x66   :  { %1235 = vmatpush.bf16.msrb.mxu3 %v1938_v1  ;;  %1216 = vmatpush.bf16.msrb.mxu0 %v2330_v13  ;;  %v1889_v48 = vld [vmem:[%s3852_s1 + $0x110] sm:$0xf]  ;;  %v2533_v49 = vld [vmem:[%s3852_s1 + $0x118] sm:$0xf0]  ;;  %v1997_v51 = vld [vmem:[%s3852_s1 + $0x1e8] sm:$0xf]  ;;  %v2106_v53 = vor.u32 %v2587_v43, %v2105_v42  ;;  %v1794_v58 = vor.u32 %v2509_v47, %v1793_v46 }
  0x67   :  { %v2560_v55 = vld [vmem:[%s3852_s1 + $0x1f0] sm:$0xf0]  ;;  %v2093_v56 = vld [vmem:[%s3852_s1 + $0x2a8] sm:$0xf]  ;;  %v1890_v59 = vor.u32 %v2533_v49, %v1889_v48  ;;  %v1781_v61 = vld [vmem:[%s3852_s1 + $0x38] sm:$0xf] }
  0x68   :  { %1203 = vmatpush.bf16.msrb.mxu2 %v2234_v20  ;;  %v2584_v57 = vld [vmem:[%s3852_s1 + $0x2b0] sm:$0xf0]  ;;  %v2506_v62 = vld [vmem:[%s3852_s1 + $0x40] sm:$0xf0]  ;;  %v1877_v63 = vld [vmem:[%s3852_s1 + $0xf8] sm:$0xf]  ;;  %v1998_v1 = vor.u32 %v2560_v55, %v1997_v51 }
  0x69   :  { %1223 = vmatpush.bf16.msrb.mxu1 %v1830_v17  ;;  %v2530_v0 = vld [vmem:[%s3852_s1 + $0x100] sm:$0xf0]  ;;  %v1985_v2 = vld [vmem:[%s3852_s1 + $0x1d0] sm:$0xf]  ;;  %v2094_v4 = vor.u32 %v2584_v57, %v2093_v56  ;;  %v2557_v5 = vld [vmem:[%s3852_s1 + $0x1d8] sm:$0xf0]  ;;  %v1782_v8 = vor.u32 %v2506_v62, %v1781_v61 }
  0x6a   :  { %1236 = vmatpush.bf16.msrb.mxu3 %v1926_v18  ;;  %1248 = vmatpush.bf16.msra.mxu0 %v2034_v24  ;;  %v2081_v6 = vld [vmem:[%s3852_s1 + $0x290] sm:$0xf]  ;;  %v2581_v7 = vld [vmem:[%s3852_s1 + $0x298] sm:$0xf0]  ;;  %v1878_v9 = vor.u32 %v2530_v0, %v1877_v63  ;;  %v1769_v10 = vld [vmem:[%s3852_s1 + $0x20] sm:$0xf]  ;;  %v1986_v15 = vor.u32 %v2557_v5, %v1985_v2 }
  0x6b   :  { %1204 = vmatmul.bf16.vlgmr.msrb.gmra.mxu2 %v3229_v32  ;;  %v2503_v11 = vld [vmem:[%s3852_s1 + $0x28] sm:$0xf0]  ;;  %v1865_v12 = vld [vmem:[%s3852_s1 + $0xe0] sm:$0xf]  ;;  %v1973_v16 = vld [vmem:[%s3852_s1 + $0x1b8] sm:$0xf]  ;;  %v2082_v17 = vor.u32 %v2581_v7, %v2081_v6 }
  0x6c   :  { %1261 = vmatpush.bf16.msra.mxu2 %v2130_v28  ;;  %v2527_v13 = vld [vmem:[%s3852_s1 + $0xe8] sm:$0xf0]  ;;  %v2554_v18 = vld [vmem:[%s3852_s1 + $0x1c0] sm:$0xf0]  ;;  %v2069_v19 = vld [vmem:[%s3852_s1 + $0x278] sm:$0xf]  ;;  %v1770_v21 = vor.u32 %v2503_v11, %v1769_v10 }
  0x6d   :  { %1224 = vmatpush.bf16.msrb.mxu1 %v1818_v31  ;;  %v2578_v20 = vld [vmem:[%s3852_s1 + $0x280] sm:$0xf0]  ;;  %v1866_v22 = vor.u32 %v2527_v13, %v1865_v12  ;;  %v1757_v23 = vld [vmem:[%s3852_s1 + $0x8] sm:$0xf]  ;;  %v2500_v24 = vld [vmem:[%s3852_s1 + $0x10] sm:$0xf0] }
  0x6e   :  { %1237 = vmatpush.bf16.msrb.mxu3 %v1914_v33  ;;  %1249 = vmatpush.bf16.msra.mxu0 %v2022_v38  ;;  %v1853_v25 = vld [vmem:[%s3852_s1 + $0xc8] sm:$0xf]  ;;  %v2524_v26 = vld [vmem:[%s3852_s1 + $0xd0] sm:$0xf0]  ;;  %v2225_v28 = vld [vmem:[%s3852_s1 + $0x3b0] sm:$0xf]  ;;  %v1974_v33 = vor.u32 %v2554_v18, %v1973_v16  ;;  %v2070_v35 = vor.u32 %v2578_v20, %v2069_v19  ;;  %v1758_v39 = vor.u32 %v2500_v24, %v1757_v23 }
  0x6f   :  { %v2617_v29 = vld [vmem:[%s3852_s1 + $0x3b8] sm:$0xf0]  ;;  %v2321_v30 = vld [vmem:[%s3852_s1 + $0x470] sm:$0xf]  ;;  %v1961_v34 = vld [vmem:[%s3852_s1 + $0x1a0] sm:$0xf]  ;;  %v1854_v40 = vor.u32 %v2524_v26, %v1853_v25 }
  0x70   :  { %1262 = vmatpush.bf16.msra.mxu2 %v2118_v41  ;;  %v2641_v31 = vld [vmem:[%s3852_s1 + $0x478] sm:$0xf0]  ;;  %v2551_v36 = vld [vmem:[%s3852_s1 + $0x1a8] sm:$0xf0]  ;;  %v2057_v37 = vld [vmem:[%s3852_s1 + $0x260] sm:$0xf]  ;;  %v2226_v41 = vor.u32 %v2617_v29, %v2225_v28 }
  0x71   :  { %1225 = vmatpush.bf16.msrb.mxu1 %v1806_v44  ;;  %v2575_v38 = vld [vmem:[%s3852_s1 + $0x268] sm:$0xf0]  ;;  %v2322_v42 = vor.u32 %v2641_v31, %v2321_v30  ;;  %v2213_v43 = vld [vmem:[%s3852_s1 + $0x398] sm:$0xf]  ;;  %v2614_v44 = vld [vmem:[%s3852_s1 + $0x3a0] sm:$0xf0]  ;;  %v1962_v47 = vor.u32 %v2551_v36, %v1961_v34 }
  0x72   :  { %1238 = vmatpush.bf16.msrb.mxu3 %v1902_v45  ;;  %1250 = vmatpush.bf16.msra.mxu0 %v2010_v50  ;;  %v2309_v45 = vld [vmem:[%s3852_s1 + $0x458] sm:$0xf]  ;;  %v2638_v46 = vld [vmem:[%s3852_s1 + $0x460] sm:$0xf0]  ;;  %v1949_v48 = vld [vmem:[%s3852_s1 + $0x188] sm:$0xf]  ;;  %v2058_v49 = vor.u32 %v2575_v38, %v2057_v37  ;;  %v2214_v57 = vor.u32 %v2614_v44, %v2213_v43 }
  0x73   :  { %2336 = vmatmul.msk.bf16.vlgmr.msrb.gmra.mxu0 %vm1036_vm0, %v3145_v52  ;;  %v2548_v50 = vld [vmem:[%s3852_s1 + $0x190] sm:$0xf0]  ;;  %v2045_v51 = vld [vmem:[%s3852_s1 + $0x248] sm:$0xf]  ;;  %v2611_v61 = vld [vmem:[%s3852_s1 + $0x388] sm:$0xf0] }
  0x74   :  { %1263 = vmatpush.bf16.msra.mxu2 %v2106_v53  ;;  %v2572_v53 = vld [vmem:[%s3852_s1 + $0x250] sm:$0xf0]  ;;  %v2333_v55 = vld [vmem:[%s3852_s1 + $0x488] sm:$0xf]  ;;  %v2297_v62 = vld [vmem:[%s3852_s1 + $0x440] sm:$0xf]  ;;  %v1950_v0 = vor.u32 %v2548_v50, %v1949_v48 }
  0x75   :  { %1226 = vmatpush.bf16.msrb.mxu1 %v1794_v58  ;;  %v2644_v56 = vld [vmem:[%s3852_s1 + $0x490] sm:$0xf0]  ;;  %v2310_v58 = vor.u32 %v2638_v46, %v2309_v45  ;;  %v2635_v63 = vld [vmem:[%s3852_s1 + $0x448] sm:$0xf0]  ;;  %v2189_v7 = vld [vmem:[%s3852_s1 + $0x368] sm:$0xf] }
  0x76   :  { %1239 = vmatpush.bf16.msrb.mxu3 %v1890_v59  ;;  %1251 = vmatpush.bf16.msra.mxu0 %v1998_v1  ;;  %v2201_v59 = vld [vmem:[%s3852_s1 + $0x380] sm:$0xf]  ;;  %v2046_v1 = vor.u32 %v2572_v53, %v2045_v51  ;;  %v2334_v2 = vor.u32 %v2644_v56, %v2333_v55  ;;  %v2298_v6 = vor.u32 %v2635_v63, %v2297_v62  ;;  %v2177_v12 = vld [vmem:[%s3852_s1 + $0x350] sm:$0xf]  ;;  %v2605_v13 = vld [vmem:[%s3852_s1 + $0x358] sm:$0xf0] }
  0x77   :  { %v2202_v5 = vor.u32 %v2611_v61, %v2201_v59  ;;  %v2629_v16 = vld [vmem:[%s3852_s1 + $0x418] sm:$0xf0]  ;;  %v2602_v19 = vld [vmem:[%s3852_s1 + $0x340] sm:$0xf0]  ;;  %v2261_v20 = vld [vmem:[%s3852_s1 + $0x3f8] sm:$0xf] }
  0x78   :  { %1264 = vmatpush.bf16.msra.mxu2 %v2094_v4  ;;  %v2652_v4 = vld [vmem:[%s3854_s3 + $0x38] sm:$0xff]  ;;  %v2153_v23 = vld [vmem:[%s3852_s1 + $0x320] sm:$0xf]  ;;  %v2599_v24 = vld [vmem:[%s3852_s1 + $0x328] sm:$0xf0]  ;;  %s1738_s21 = sshll.u32 %s3860_s9, 4  ;;  %s1739_s21 = int_to_ptr.hbm [resolvable:$true] %s1738_s21 }
  0x79   :  { %1227 = vmatpush.bf16.msrb.mxu1 %v1782_v8  ;;  %v2632_v8 = vld [vmem:[%s3852_s1 + $0x430] sm:$0xf0]  ;;  %v2249_v25 = vld [vmem:[%s3852_s1 + $0x3e0] sm:$0xf]  ;;  %v2623_v26 = vld [vmem:[%s3852_s1 + $0x3e8] sm:$0xf0]  ;;  %v2154_v30 = vor.u32 %v2599_v24, %v2153_v23 }
  0x7a   :  { %1240 = vmatpush.bf16.msrb.mxu3 %v1878_v9  ;;  %1252 = vmatpush.bf16.msra.mxu0 %v1986_v15  ;;  %v2651_v9 = vld [vmem:[%s3854_s3 + $0x30] sm:$0xff]  ;;  %v2650_v28 = vld [vmem:[%s3854_s3 + $0x28] sm:$0xff]  ;;  %v2649_v29 = vld [vmem:[%s3854_s3 + $0x20] sm:$0xff]  ;;  %v2250_v31 = vor.u32 %v2623_v26, %v2249_v25 }
  0x7b   :  { %v2273_v15 = vld [vmem:[%s3852_s1 + $0x410] sm:$0xf]  ;;  %v2596_v34 = vld [vmem:[%s3852_s1 + $0x310] sm:$0xf0]  ;;  %v2660_v44 = vld [vmem:[%s3854_s3 + $0x78] sm:$0xff] }
  0x7c   :  { %1265 = vmatpush.bf16.msra.mxu2 %v2082_v17  ;;  %v2178_v17 = vor.u32 %v2605_v13, %v2177_v12  ;;  %v2274_v18 = vor.u32 %v2629_v16, %v2273_v15  ;;  %v2620_v36 = vld [vmem:[%s3852_s1 + $0x3d0] sm:$0xf0]  ;;  %v2657_v61 = vld [vmem:[%s3854_s3 + $0x60] sm:$0xff] }
  0x7d   :  { %1228 = vmatpush.bf16.msrb.mxu1 %v1770_v21  ;;  %v2653_v13 = vld [vmem:[%s3854_s3 + $0x40] sm:$0xff]  ;;  %v2667_v25 = vld [vmem:[%s3854_s3 + $0xb0] sm:$0xff] }
  0x7e   :  { %1241 = vmatpush.bf16.msrb.mxu3 %v1866_v22  ;;  %1253 = vmatpush.bf16.msra.mxu0 %v1974_v33  ;;  %v2141_v33 = vld [vmem:[%s3852_s1 + $0x308] sm:$0xf] }
  0x7f   :  { %v2142_v37 = vor.u32 %v2596_v34, %v2141_v33 }
  0x80   :  { %1266 = vmatpush.bf16.msra.mxu2 %v2070_v35  ;;  %v2237_v35 = vld [vmem:[%s3852_s1 + $0x3c8] sm:$0xf] }
  0x81   :  { %1229 = vmatpush.bf16.msrb.mxu1 %v1758_v39  ;;  %v2238_v38 = vor.u32 %v2620_v36, %v2237_v35  ;;  %v2648_v39 = vld [vmem:[%s3854_s3 + $0x18] sm:$0xff]  ;;  %v2665_v35 = vld [vmem:[%s3854_s3 + $0xa0] sm:$0xff] }
  0x82   :  { %1242 = vmatpush.bf16.msrb.mxu3 %v1854_v40  ;;  %1254 = vmatpush.bf16.msra.mxu0 %v1962_v47  ;;  %v2647_v40 = vld [vmem:[%s3854_s3 + $0x10] sm:$0xff] }
  0x83   :  { %v2659_v47 = vld [vmem:[%s3854_s3 + $0x70] sm:$0xff] }
  0x84   :  { %1267 = vmatpush.bf16.msra.mxu2 %v2058_v49  ;;  %1230 = vmatmul.bf16.vlgmr.msrb.gmra.mxu1 %v3016_v54  ;;  %v2285_v54 = vld [vmem:[%s3852_s1 + $0x428] sm:$0xf] }
  0x85   :  { %1274 = vmatpush.bf16.msra.mxu1 %v2226_v41  ;;  %1243 = vmatmul.bf16.vlgmr.msrb.gmra.mxu3 %v3042_v3  ;;  %v2608_v3 = vld [vmem:[%s3852_s1 + $0x370] sm:$0xf0]  ;;  %v2286_v11 = vor.u32 %v2632_v8, %v2285_v54 }
  0x86   :  { %1287 = vmatpush.bf16.msra.mxu3 %v2322_v42  ;;  %1255 = vmatpush.bf16.msra.mxu0 %v1950_v0  ;;  %v2190_v10 = vor.u32 %v2608_v3, %v2189_v7  ;;  %v2646_v42 = vld [vmem:[%s3854_s3 + $0x8] sm:$0xff] }
  0x88   :  { %1268 = vmatpush.bf16.msra.mxu2 %v2046_v1 }
  0x89   :  { %1275 = vmatpush.bf16.msra.mxu1 %v2214_v57  ;;  %1256 = vmatmul.bf16.vlgmr.msra.gmra.mxu0 %v3024_v60  ;;  %v2165_v60 = vld [vmem:[%s3852_s1 + $0x338] sm:$0xf] }
  0x8a   :  { %1288 = vmatpush.bf16.msra.mxu3 %v2310_v58  ;;  %1307 = vmatpush.bf16.msrb.mxu0 %v2334_v2  ;;  %v2166_v21 = vor.u32 %v2602_v19, %v2165_v60  ;;  %v2658_v58 = vld [vmem:[%s3854_s3 + $0x68] sm:$0xff] }
  0x8b   :  { %1269 = vmatmul.bf16.vlgmr.msra.gmra.mxu2 %v3066_v14  ;;  %v2626_v14 = vld [vmem:[%s3852_s1 + $0x400] sm:$0xf0] }
  0x8c   :  { %1515 = vmatpush.bf16.msrb.mxu2 %v2652_v4  ;;  %v2262_v22 = vor.u32 %v2626_v14, %v2261_v20  ;;  %v2656_v4 = vld [vmem:[%s3854_s3 + $0x58] sm:$0xff] }
  0x8d   :  { %1276 = vmatpush.bf16.msra.mxu1 %v2202_v5 }
  0x8e   :  { %1289 = vmatpush.bf16.msra.mxu3 %v2298_v6  ;;  %1528 = vmatpush.bf16.msra.mxu0 %v2660_v44  ;;  %v2655_v6 = vld [vmem:[%s3854_s3 + $0x50] sm:$0xff]  ;;  %v2661_v44 = vld [vmem:[%s3854_s3 + $0x80] sm:$0xff] }
  0x90   :  { %1516 = vmatpush.bf16.msrb.mxu2 %v2651_v9 }
  0x91   :  { %1277 = vmatpush.bf16.msra.mxu1 %v2190_v10  ;;  %v2654_v10 = vld [vmem:[%s3854_s3 + $0x48] sm:$0xff] }
  0x92   :  { %1290 = vmatpush.bf16.msra.mxu3 %v2286_v11  ;;  %1529 = vmatpush.bf16.msra.mxu0 %v2659_v47 }
  0x94   :  { %1517 = vmatpush.bf16.msrb.mxu2 %v2650_v28  ;;  %v2666_v28 = vld [vmem:[%s3854_s3 + $0xa8] sm:$0xff] }
  0x95   :  { %1278 = vmatpush.bf16.msra.mxu1 %v2178_v17 }
  0x96   :  { %1291 = vmatpush.bf16.msra.mxu3 %v2274_v18  ;;  %1530 = vmatpush.bf16.msra.mxu0 %v2658_v58 }
  0x98   :  { %1518 = vmatpush.bf16.msrb.mxu2 %v2649_v29 }
  0x99   :  { %1279 = vmatpush.bf16.msra.mxu1 %v2166_v21  ;;  %2337 = vmatmul.msk.bf16.vlgmr.msrb.gmra.mxu0 %vm1036_vm0, %v3145_v52  ;;  %v2645_v52 = vld [vmem:[%s3854_s3] sm:$0xff] }
  0x9a   :  { %1292 = vmatpush.bf16.msra.mxu3 %v2262_v22  ;;  %1531 = vmatpush.bf16.msra.mxu0 %v2657_v61  ;;  %v2668_v22 = vld [vmem:[%s3854_s3 + $0xb8] sm:$0xff] }
  0x9c   :  { %1519 = vmatpush.bf16.msrb.mxu2 %v2648_v39 }
  0x9d   :  { %1280 = vmatpush.bf16.msra.mxu1 %v2154_v30 }
  0x9e   :  { %1293 = vmatpush.bf16.msra.mxu3 %v2250_v31  ;;  %1532 = vmatpush.bf16.msra.mxu0 %v2656_v4 }
  0xa0   :  { %1520 = vmatpush.bf16.msrb.mxu2 %v2647_v40  ;;  %v1049_v41 = vpop.f32.mrf.mxu0  ;;  %v2664_v40 = vld [vmem:[%s3854_s3 + $0x98] sm:$0xff] }
  0xa1   :  { %1281 = vmatpush.bf16.msra.mxu1 %v2142_v37 }
  0xa2   :  { %1294 = vmatpush.bf16.msra.mxu3 %v2238_v38  ;;  %1533 = vmatpush.bf16.msra.mxu0 %v2655_v6 }
  0xa3   :  { %v1062_v43 = vpop.f32.mrf.mxu1 }
  0xa4   :  { %1282 = vmatmul.bf16.vlgmr.msra.gmra.mxu1 %v3218_v27  ;;  %1521 = vmatpush.bf16.msrb.mxu2 %v2646_v42  ;;  %v3738_v27 = vld [vmem:[%s3853_s2] sm:$0x7] }
  0xa5   :  { %1295 = vmatmul.bf16.vlgmr.msra.gmra.mxu3 %v3229_v32  ;;  %v246_v46 = vperm.slane %v3738_v27, 0  ;;  %v247_v15 = vperm.slane %v3738_v27, 1  ;;  %1541 = vmatpush.bf16.msrb.mxu1 %v2668_v22 }
  0xa6   :  { %1534 = vmatpush.bf16.msra.mxu0 %v2654_v10  ;;  %v2671_v10 = vld [vmem:[%s3856_s5 + $0x10] sm:$0xff] }
  0xa7   :  { %v1050_v50 = vadd.f32 %v1049_v41, %v246_v46  ;;  %v2663_v41 = vld [vmem:[%s3854_s3 + $0x90] sm:$0xff] }
  0xa8   :  { %1522 = vmatpush.bf16.msrb.mxu2 %v2645_v52  ;;  %v1051_v32 = vpop.f32.mrf.mxu0  ;;  %v1088_v48 = vpop.f32.mrf.mxu3 }
  0xa9   :  { %v1063_v53 = vadd.f32 %v1062_v43, %v1050_v50  ;;  %1542 = vmatpush.bf16.msrb.mxu1 %v2667_v25  ;;  %v2662_v43 = vld [vmem:[%s3854_s3 + $0x88] sm:$0xff] }
  0xaa   :  { %v1075_v45 = vpop.f32.mrf.mxu2  ;;  %1535 = vmatpush.bf16.msra.mxu0 %v2653_v13  ;;  %v2670_v13 = vld [vmem:[%s3856_s5 + $0x8] sm:$0xff] }
  0xab   :  { %v1064_v49 = vpop.f32.mrf.mxu1  ;;  %v1076_v56 = vadd.f32 %v1075_v45, %v1063_v53 }
  0xac   :  { %v248_v49 = vperm.slane %v3738_v27, 2  ;;  %v2676_v27 = vld [vmem:[%s3856_s5 + $0x38] sm:$0xff] }
  0xad   :  { %v1089_v59 = vadd.f32 %v1088_v48, %v1076_v56  ;;  %1543 = vmatpush.bf16.msrb.mxu1 %v2666_v28  ;;  %1624 = vmatpush.bf16.msrb.mxu3 %v2676_v27 }
  0xb0   :  { %v1090_v55 = vpop.f32.mrf.mxu3 }
  0xb1   :  { %1544 = vmatpush.bf16.msrb.mxu1 %v2665_v35 }
  0xb2   :  { %v1077_v51 = vpop.f32.mrf.mxu2 }
  0xb5   :  { %1545 = vmatpush.bf16.msrb.mxu1 %v2664_v40 }
  0xb9   :  { %1546 = vmatpush.bf16.msrb.mxu1 %v2663_v41 }
  0xba   :  { %v1127_v57 = vpop.f32.mrf.mxu2 }
  0xbd   :  { %1547 = vmatpush.bf16.msrb.mxu1 %v2662_v43 }
  0xc0   :  { %v1101_v62 = vpop.f32.mrf.mxu0 }
  0xc1   :  { %v1102_v63 = vadd.f32 %v1101_v62, %v1089_v59  ;;  %1548 = vmatpush.bf16.msrb.mxu1 %v2661_v44 }
  0xc2   :  { %v1129_v2 = vpop.f32.mrf.mxu2 }
  0xc3   :  { %v1114_v0 = vpop.f32.mrf.mxu1 }
  0xc4   :  { %v1115_v1 = vadd.f32 %v1114_v0, %v1102_v63 }
  0xc6   :  { %v1128_v5 = vadd.f32 %v1127_v57, %v1115_v1 }
  0xc8   :  { %v1313_v7 = vmax.f32 %v1128_v5, 0.0  ;;  %v1140_v3 = vpop.f32.mrf.mxu3  ;;  %v1103_v54 = vpop.f32.mrf.mxu0 }
  0xc9   :  { %v1141_v17 = vadd.f32 %v1140_v3, %v247_v15  ;;  %v2675_v3 = vld [vmem:[%s3856_s5 + $0x30] sm:$0xff]  ;;  %v2674_v54 = vld [vmem:[%s3856_s5 + $0x28] sm:$0xff]  ;;  %v2669_v15 = vld [vmem:[%s3856_s5] sm:$0xff] }
  0xca   :  { %v1316_v8 = vpack.c.bf16 %v1313_v7, %v1313_v7  ;;  %1625 = vmatpush.bf16.msrb.mxu3 %v2675_v3 }
  0xcb   :  { %v1116_v9 = vpop.f32.mrf.mxu1 }
  0xcc   :  { %1523 = vmatmul.bf16.vlgmr.msrb.gmra.mxu2 %v1316_v8  ;;  %v2673_v8 = vld [vmem:[%s3856_s5 + $0x20] sm:$0xff]  ;;  %v2672_v9 = vld [vmem:[%s3856_s5 + $0x18] sm:$0xff] }
  0xce   :  { %v1153_v11 = vpop.f32.mrf.mxu2  ;;  %1626 = vmatpush.bf16.msrb.mxu3 %v2674_v54 }
  0xcf   :  { %v1154_v18 = vadd.f32 %v1153_v11, %v1141_v17  ;;  %v2683_v17 = vld [vmem:[%s3858_s7 + $0x30] sm:$0xff] }
  0xd0   :  { %v1142_v12 = vpop.f32.mrf.mxu3 }
  0xd2   :  { %1627 = vmatpush.bf16.msrb.mxu3 %v2673_v8 }
  0xd6   :  { %v1155_v16 = vpop.f32.mrf.mxu2  ;;  %1628 = vmatpush.bf16.msrb.mxu3 %v2672_v9 }
  0xd7   :  { %v2684_v16 = vld [vmem:[%s3858_s7 + $0x38] sm:$0xff] }
  0xd8   :  { %1707 = vmatpush.bf16.msra.mxu2 %v2684_v16 }
  0xda   :  { %1629 = vmatpush.bf16.msrb.mxu3 %v2671_v10 }
  0xdc   :  { %1708 = vmatpush.bf16.msra.mxu2 %v2683_v17 }
  0xde   :  { %1630 = vmatpush.bf16.msrb.mxu3 %v2670_v13 }
  0xe0   :  { %v1166_v60 = vpop.f32.mrf.mxu0 }
  0xe1   :  { %v1179_v19 = vpop.f32.mrf.mxu1  ;;  %v1167_v20 = vadd.f32 %v1166_v60, %v1154_v18  ;;  %v2682_v18 = vld [vmem:[%s3858_s7 + $0x28] sm:$0xff]  ;;  %v2681_v60 = vld [vmem:[%s3858_s7 + $0x20] sm:$0xff] }
  0xe2   :  { %1631 = vmatpush.bf16.msrb.mxu3 %v2669_v15  ;;  %1709 = vmatpush.bf16.msra.mxu2 %v2682_v18 }
  0xe3   :  { %v1180_v14 = vadd.f32 %v1179_v19, %v1167_v20  ;;  %v2680_v19 = vld [vmem:[%s3858_s7 + $0x18] sm:$0xff]  ;;  %v2686_v20 = vld [vmem:[%s3855_s4] ss:$0 sm:$0xff] }
  0xe6   :  { %1710 = vmatpush.bf16.msra.mxu2 %v2681_v60 }
  0xe8   :  { %v1192_v21 = vpop.f32.mrf.mxu3  ;;  %v1168_v23 = vpop.f32.mrf.mxu0 }
  0xe9   :  { %v1181_v24 = vpop.f32.mrf.mxu1  ;;  %v1193_v26 = vadd.f32 %v1192_v21, %v1180_v14  ;;  %v2679_v14 = vld [vmem:[%s3858_s7 + $0x10] sm:$0xff] }
  0xea   :  { %1711 = vmatpush.bf16.msra.mxu2 %v2680_v19 }
  0xee   :  { %v1205_v29 = vpop.f32.mrf.mxu2  ;;  %1712 = vmatpush.bf16.msra.mxu2 %v2679_v14 }
  0xef   :  { %v1206_v30 = vadd.f32 %v1205_v29, %v1193_v26  ;;  %v2678_v29 = vld [vmem:[%s3858_s7 + $0x8] sm:$0xff] }
  0xf0   :  { %v1194_v31 = vpop.f32.mrf.mxu3  ;;  %v1218_v33 = vpop.f32.mrf.mxu0 }
  0xf1   :  { %v1219_v34 = vadd.f32 %v1218_v33, %v1206_v30  ;;  %v2677_v30 = vld [vmem:[%s3858_s7] sm:$0xff] }
  0xf2   :  { %1713 = vmatpush.bf16.msra.mxu2 %v2678_v29  ;;  %v2687_v31 = vld [vmem:[%s3857_s6] ss:$0 sm:$0xff]  ;;  %s2719_s6 = smov [#allocation2]  }
  0xf3   :  { %v1314_v36 = vmax.f32 %v1219_v34, 0.0  ;;  %s1736_s7 = sshll.u32 %s2719_s6, 4  ;;  %s1737_s7 = int_to_ptr.vmem [resolvable:$true] %s1736_s7 }
  0xf5   :  { %v1317_v37 = vpack.c.bf16 %v1314_v36, %v1314_v36 }
  0xf6   :  { %v1207_v38 = vpop.f32.mrf.mxu2  ;;  %1714 = vmatpush.bf16.msra.mxu2 %v2677_v30 }
  0xf7   :  { %1536 = vmatmul.bf16.vlgmr.msra.gmra.mxu0 %v1317_v37  ;;  %v2688_v38 = vld [vmem:[%s3859_s8] ss:$0 sm:$0xff] }
  0xf8   :  { %v1220_v39 = vpop.f32.mrf.mxu0 }
 0x101   :  { %v1231_v42 = vpop.f32.mrf.mxu1 }
 0x102   :  { %v1232_v50 = vadd.f32 %v1231_v42, %v248_v49 }
 0x106   :  { %v1257_v32 = vpop.f32.mrf.mxu0 }
 0x108   :  { %v1244_v52 = vpop.f32.mrf.mxu3 }
 0x109   :  { %v1233_v45 = vpop.f32.mrf.mxu1  ;;  %v1245_v55 = vadd.f32 %v1244_v52, %v1232_v50 }
 0x10b   :  { %v1258_v56 = vadd.f32 %v1257_v32, %v1245_v55 }
 0x10e   :  { %v1270_v46 = vpop.f32.mrf.mxu2  ;;  %v1259_v48 = vpop.f32.mrf.mxu0 }
 0x10f   :  { %v1271_v59 = vadd.f32 %v1270_v46, %v1258_v56 }
 0x110   :  { %v1246_v47 = vpop.f32.mrf.mxu3 }
 0x116   :  { %v1272_v51 = vpop.f32.mrf.mxu2  ;;  %v1309_v53 = vpop.f32.mrf.mxu0 }
 0x11e   :  { %v1311_v58 = vpop.f32.mrf.mxu0 }
 0x121   :  { %v1283_v57 = vpop.f32.mrf.mxu1 }
 0x122   :  { %v1284_v61 = vadd.f32 %v1283_v57, %v1271_v59 }
 0x128   :  { %v1296_v62 = vpop.f32.mrf.mxu3 }
 0x129   :  { %v1297_v63 = vadd.f32 %v1296_v62, %v1284_v61  ;;  %v1285_v0 = vpop.f32.mrf.mxu1 }
 0x12b   :  { %v1310_v1 = vadd.f32 %v1309_v53, %v1297_v63 }
 0x12d   :  { %v1315_v2 = vmax.f32 %v1310_v1, 0.0 }
 0x12f   :  { %v1318_v4 = vpack.c.bf16 %v1315_v2, %v1315_v2 }
 0x130   :  { %v1298_v5 = vpop.f32.mrf.mxu3 }
 0x131   :  { %1549 = vmatmul.bf16.vlgmr.msrb.gmra.mxu1 %v1318_v4 }
 0x14f   :  { %v1524_v6 = vpop.f32.mrf.mxu2 }
 0x150   :  { %v1525_v21 = vadd.f32 %v2686_v20, %v1524_v6 }
 0x157   :  { %v1526_v7 = vpop.f32.mrf.mxu2 }
 0x174   :  { %v1537_v11 = vpop.f32.mrf.mxu0 }
 0x175   :  { %v1538_v22 = vadd.f32 %v1537_v11, %v1525_v21 }
 0x17c   :  { %v1539_v12 = vpop.f32.mrf.mxu0 }
 0x1ae   :  { %v1550_v23 = vpop.f32.mrf.mxu1 }
 0x1af   :  { %v1551_v24 = vadd.f32 %v1550_v23, %v1538_v22 }
 0x1b1   :  { %v1554_v25 = vmax.f32 %v1551_v24, 0.0 }
 0x1b3   :  { %v1555_v26 = vpack.c.bf16 %v1554_v25, %v1554_v25 }
 0x1b5   :  { %1632 = vmatmul.bf16.vlgmr.msrb.gmra.mxu3 %v1555_v26 }
 0x1b6   :  { %v1552_v28 = vpop.f32.mrf.mxu1 }
 0x238   :  { %v1633_v33 = vpop.f32.mrf.mxu3 }
 0x239   :  { %v1634_v34 = vadd.f32 %v2687_v31, %v1633_v33 }
 0x23b   :  { %v1637_v35 = vmax.f32 %v1634_v34, 0.0 }
 0x23d   :  { %v1638_v36 = vpack.c.bf16 %v1637_v35, %v1637_v35 }
 0x23f   :  { %1715 = vmatmul.bf16.vlgmr.msra.gmra.mxu2 %v1638_v36 }
 0x240   :  { %v1635_v37 = vpop.f32.mrf.mxu3 }
 0x2c2   :  { %v1716_v39 = vpop.f32.mrf.mxu2 }
 0x2c3   :  { %v1717_v40 = vadd.f32 %v2688_v38, %v1716_v39 }
 0x2c5   :  { %1720 = vmax.xlane.f32.xlu0 %v1717_v40 }
 0x2ca   :  { %v1718_v41 = vpop.f32.mrf.mxu2 }
 0x338   :  { %v1721_v42 = vpop.xlane.xlu0 %1720 }
 0x339   :  { %v1722_v43 = vsub.f32 %v1717_v40, %v1721_v42 }
 0x33b   :  { %v1723_v52 = vmul.f32 1.442695, %v1722_v43 }
 0x33d   :  { %2689 = vpow2.f32 %v1723_v52 }
 0x343   :  { %v2690_v32 = vpop.eup %2689 }
 0x344   :  { %1725 = vadd.xlane.f32.xlu0 %v2690_v32 }
 0x3b7   :  { %v1726_v44 = vpop.xlane.xlu0 %1725 }
 0x3b8   :  { %2691 = vlog2.f32 %v1726_v44 }
 0x3be   :  { %v2692_v45 = vpop.eup %2691 }
 0x3bf   :  { %v1728_v46 = vmul.f32 0.6931472, %v2692_v45 }
 0x3c1   :  { %v1729_v47 = vsub.f32 %v1722_v43, %v1728_v46 }
 0x3c3   :  { %1730 = vst [vmem:[#allocation2] sm:$0xff] %v1729_v47 }
 0x3c4   :  { %1741 = dma.vmem_to_hbm [thread:$0]  %s1737_s7, 128, %s1739_s21, [#allocation3]  }
 0x3c5   :  { %2717 = dma.done.wait [#allocation3], 128  }
 0x3c6   :  { %2718 = vsyncadd [#allocation3], 4294967168 }
 0x3c7   :  { %1746 = vsyncpa [#allocation3], 1 }

</bundles_post_ra>
